<compile_context>
chip_gen: v7x
topology: tpu7x:2x2x1
jax: 0.10.0
libtpu: 0.0.40
codegen_flags: <defaults>
</compile_context>

<pallas_src>
import jax
import jax.numpy as jnp
from jax.experimental import pallas as pl
from jax.experimental.pallas import tpu as pltpu

FEAT = 2048
H1 = 512
H2 = 64
H2P = 128    # zero-padded hidden-2 width (lane-dense)
OUT = 1
OUTP = 128   # lane-dense padded output width (only column 0 is meaningful)


def _classifier_kernel(z_ref, w1_ref, b1_ref, w2_ref, b2_ref, w3_ref, b3_ref,
                       o_ref):
    # Layer 1: (tb, 2048) bf16 @ (2048, 512) bf16 -> f32, + bias, ReLU(True).
    h1 = jnp.dot(z_ref[...], w1_ref[...], preferred_element_type=jnp.float32)
    h1 = jnp.maximum(h1 + b1_ref[...], 0.0)
    # Dropout(p=0.2): identity in eval mode.

    # Layer 2: (tb, 512) bf16 @ (512, 128) bf16 -> f32, + bias, ReLU(True).
    # Columns 64..127 of w2/b2 are zero-padded, so padded lanes stay exactly 0.
    h2 = jnp.dot(h1.astype(jnp.bfloat16), w2_ref[...],
                 preferred_element_type=jnp.float32)
    h2 = jnp.maximum(h2 + b2_ref[...], 0.0)
    # Dropout(p=0.2): identity in eval mode.

    # Layer 3: lane-dense (tb, 128) MXU matmul; w3 has only column 0 nonzero and
    # rows 64..127 zero, so column 0 of y is the true logit, other lanes are bias-only
    # garbage that the wrapper slices off.  Unmasked vst epilogue.
    y = jnp.dot(h2.astype(jnp.bfloat16), w3_ref[...],
                preferred_element_type=jnp.float32) + b3_ref[...]
    o_ref[...] = y.astype(o_ref.dtype)


def _round_up(x, m):
    return ((x + m - 1) // m) * m


def chest_classifier(z, prepared_params, *, tb=256):
    """ChestModel classifier head on backbone features z: (B, 2048) -> (B, 1)."""
    w1, b1, w2, b2, w3, b3 = prepared_params
    B = z.shape[0]

    # Batch tile: >= 16 rows (bf16 sublane packing), and capped near Bp/2 so that
    # the 'parallel' batch axis produces >= 2 tiles when B allows (v7x dual-TC).
    half = _round_up(max(B // 2, 1), 16)
    tb = max(16, min(tb, half))
    Bp = _round_up(B, tb)
    nb = Bp // tb

    pad = Bp - B
    if pad:
        z = jnp.pad(z, ((0, pad), (0, 0)))
    z = z.astype(jnp.bfloat16)

    out = pl.pallas_call(
        _classifier_kernel,
        out_shape=jax.ShapeDtypeStruct((Bp, OUTP), jnp.float32),
        grid_spec=pltpu.PrefetchScalarGridSpec(
            num_scalar_prefetch=0,
            grid=(nb,),
            in_specs=[
                pl.BlockSpec((tb, FEAT), lambda i: (i, 0)),     # z tile (bf16)
                pl.BlockSpec((FEAT, H1), lambda i: (0, 0)),     # w1 resident (bf16)
                pl.BlockSpec((1, H1), lambda i: (0, 0)),        # b1 resident
                pl.BlockSpec((H1, H2P), lambda i: (0, 0)),      # w2 resident (bf16, padded)
                pl.BlockSpec((1, H2P), lambda i: (0, 0)),       # b2 resident (padded)
                pl.BlockSpec((H2P, OUTP), lambda i: (0, 0)),    # w3 resident (bf16, padded)
                pl.BlockSpec((1, OUTP), lambda i: (0, 0)),      # b3 resident (padded)
            ],
            out_specs=pl.BlockSpec((tb, OUTP), lambda i: (i, 0)),
        ),
        compiler_params=pltpu.CompilerParams(
            dimension_semantics=("parallel",),
            vmem_limit_bytes=32 << 20,
        ),
    )(z, w1, b1, w2, b2, w3, b3)
    return out[:B, :OUT]


def init_params(key):
    """Deterministic init matching nn.Linear default (U(-1/sqrt(fan_in), +)).

    Weights stored transposed vs PyTorch, as (in_features, out_features)."""
    ks = jax.random.split(key, 6)

    def linear(kw, kb, fan_in, fan_out):
        bound = 1.0 / jnp.sqrt(jnp.float32(fan_in))
        w = jax.random.uniform(kw, (fan_in, fan_out), jnp.float32, -bound, bound)
        b = jax.random.uniform(kb, (1, fan_out), jnp.float32, -bound, bound)
        return w, b

    w1, b1 = linear(ks[0], ks[1], FEAT, H1)
    w2, b2 = linear(ks[2], ks[3], H1, H2)
    w3, b3 = linear(ks[4], ks[5], H2, OUT)
    return (w1, b1, w2, b2, w3, b3)


def prepare_params(params):
    """One-time offline prep: bf16 weights + zero-pad hidden-2 (64->128) and the
    output column (1->128) so every MXU operand / output slab is lane-dense."""
    w1, b1, w2, b2, w3, b3 = params
    w1p = w1.astype(jnp.bfloat16)                                        # (2048, 512)
    w2p = jnp.pad(w2, ((0, 0), (0, H2P - H2))).astype(jnp.bfloat16)      # (512, 128)
    b2p = jnp.pad(b2, ((0, 0), (0, H2P - H2)))                           # (1, 128)
    w3p = jnp.pad(w3, ((0, H2P - H2), (0, OUTP - OUT))).astype(jnp.bfloat16)  # (128, 128)
    b3p = jnp.pad(b3, ((0, 0), (0, OUTP - OUT)))                         # (1, 128)
    return (w1p, b1, w2p, b2p, w3p, b3p)


def _reference_f32(z, params):
    w1, b1, w2, b2, w3, b3 = params
    h1 = jnp.maximum(z @ w1 + b1, 0.0)
    h2 = jnp.maximum(h1 @ w2 + b2, 0.0)
    return h2 @ w3 + b3


def _reference_matched(z, prepared_params):
    """Same bf16/padded arithmetic as the kernel, in plain jnp."""
    w1, b1, w2, b2, w3, b3 = prepared_params
    zb = z.astype(jnp.bfloat16)
    h1 = jnp.maximum(
        jnp.dot(zb, w1, preferred_element_type=jnp.float32) + b1, 0.0)
    h2 = jnp.maximum(
        jnp.dot(h1.astype(jnp.bfloat16), w2,
                preferred_element_type=jnp.float32) + b2, 0.0)
    y = jnp.dot(h2.astype(jnp.bfloat16), w3,
                preferred_element_type=jnp.float32) + b3
    return y[:, :OUT]


if __name__ == "__main__":
    key = jax.random.PRNGKey(0)
    k_feat, k_par = jax.random.split(key)

    # Features that the frozen inception_v3 backbone would produce: (B, 2048).
    B = 2
    z = jax.random.normal(k_feat, (B, FEAT), dtype=jnp.float32)
    params = init_params(k_par)
    prepped = prepare_params(params)

    out = chest_classifier(z, prepped)
    out = jax.block_until_ready(out)
    assert out.shape == (B, OUT)

    # Check against a matched-precision (bf16 weights/activations) reference.
    ref_m = _reference_matched(z, prepped)
    assert jnp.allclose(out, ref_m, atol=5e-3, rtol=5e-3), \
        "mismatch vs matched-precision reference"

    # Fidelity check against the pure-f32 PyTorch-equivalent math.
    ref_f = _reference_f32(z, params)
    assert jnp.allclose(out, ref_f, atol=5e-2, rtol=5e-2), \
        "mismatch vs f32 reference"

    print("KERNEL_OK")
</pallas_src>

<mosaic_0001>
module attributes {stable_mosaic.version = 11 : i64} {
  func.func @_classifier_kernel(%arg0: i32, %arg1: memref<16x2048xbf16, #tpu.memory_space<vmem>>, %arg2: memref<2048x512xbf16, #tpu.memory_space<vmem>>, %arg3: memref<1x512xf32, #tpu.memory_space<vmem>>, %arg4: memref<512x128xbf16, #tpu.memory_space<vmem>>, %arg5: memref<1x128xf32, #tpu.memory_space<vmem>>, %arg6: memref<128x128xbf16, #tpu.memory_space<vmem>>, %arg7: memref<1x128xf32, #tpu.memory_space<vmem>>, %arg8: memref<16x128xf32, #tpu.memory_space<vmem>>) attributes {dimension_semantics = [#tpu.dimension_semantics<parallel>], iteration_bounds = array<i64: 1>, scalar_prefetch = 0 : i64, scratch_operands = 0 : i64, tpu.core_type = #tpu.core_type<tc>, window_params = [{transform_indices = @transform_0, window_bounds = array<i64: 16, 2048>}, {pipeline_mode = #tpu.pipeline_mode<synchronous>, transform_indices = @transform_1, window_bounds = array<i64: 2048, 512>}, {pipeline_mode = #tpu.pipeline_mode<synchronous>, transform_indices = @transform_2, window_bounds = array<i64: 1, 512>}, {pipeline_mode = #tpu.pipeline_mode<synchronous>, transform_indices = @transform_3, window_bounds = array<i64: 512, 128>}, {pipeline_mode = #tpu.pipeline_mode<synchronous>, transform_indices = @transform_4, window_bounds = array<i64: 1, 128>}, {pipeline_mode = #tpu.pipeline_mode<synchronous>, transform_indices = @transform_5, window_bounds = array<i64: 128, 128>}, {pipeline_mode = #tpu.pipeline_mode<synchronous>, transform_indices = @transform_6, window_bounds = array<i64: 1, 128>}, {transform_indices = @transform_7, window_bounds = array<i64: 16, 128>}]} {
    %c0 = arith.constant 0 : index
    %c0_0 = arith.constant 0 : index
    %0 = vector.load %arg1[%c0, %c0_0] : memref<16x2048xbf16, #tpu.memory_space<vmem>>, vector<16x2048xbf16>
    %c0_1 = arith.constant 0 : index
    %c0_2 = arith.constant 0 : index
    %1 = vector.load %arg2[%c0_1, %c0_2] : memref<2048x512xbf16, #tpu.memory_space<vmem>>, vector<2048x512xbf16>
    %cst = arith.constant dense<0.000000e+00> : vector<16x512xf32>
    %2 = tpu.matmul %0, %1, %cst {dimension_numbers = #tpu.dot_dimension_numbers<[1], [0], [0], [1], [0, 0, 1, 1], [], []>} : vector<16x2048xbf16>, vector<2048x512xbf16>, vector<16x512xf32> -> vector<16x512xf32>
    %c0_3 = arith.constant 0 : index
    %c0_4 = arith.constant 0 : index
    %3 = vector.load %arg3[%c0_3, %c0_4] : memref<1x512xf32, #tpu.memory_space<vmem>>, vector<1x512xf32>
    %4 = vector.broadcast %3 : vector<1x512xf32> to vector<16x512xf32>
    %5 = arith.addf %2, %4 : vector<16x512xf32>
    %cst_5 = arith.constant 0.000000e+00 : f32
    %6 = vector.broadcast %cst_5 : f32 to vector<16x512xf32>
    %7 = arith.maximumf %5, %6 : vector<16x512xf32>
    %8 = arith.truncf %7 : vector<16x512xf32> to vector<16x512xbf16>
    %c0_6 = arith.constant 0 : index
    %c0_7 = arith.constant 0 : index
    %9 = vector.load %arg4[%c0_6, %c0_7] : memref<512x128xbf16, #tpu.memory_space<vmem>>, vector<512x128xbf16>
    %cst_8 = arith.constant dense<0.000000e+00> : vector<16x128xf32>
    %10 = tpu.matmul %8, %9, %cst_8 {dimension_numbers = #tpu.dot_dimension_numbers<[1], [0], [0], [1], [0, 0, 1, 1], [], []>} : vector<16x512xbf16>, vector<512x128xbf16>, vector<16x128xf32> -> vector<16x128xf32>
    %c0_9 = arith.constant 0 : index
    %c0_10 = arith.constant 0 : index
    %11 = vector.load %arg5[%c0_9, %c0_10] : memref<1x128xf32, #tpu.memory_space<vmem>>, vector<1x128xf32>
    %12 = vector.broadcast %11 : vector<1x128xf32> to vector<16x128xf32>
    %13 = arith.addf %10, %12 : vector<16x128xf32>
    %cst_11 = arith.constant 0.000000e+00 : f32
    %14 = vector.broadcast %cst_11 : f32 to vector<16x128xf32>
    %15 = arith.maximumf %13, %14 : vector<16x128xf32>
    %16 = arith.truncf %15 : vector<16x128xf32> to vector<16x128xbf16>
    %c0_12 = arith.constant 0 : index
    %c0_13 = arith.constant 0 : index
    %17 = vector.load %arg6[%c0_12, %c0_13] : memref<128x128xbf16, #tpu.memory_space<vmem>>, vector<128x128xbf16>
    %cst_14 = arith.constant dense<0.000000e+00> : vector<16x128xf32>
    %18 = tpu.matmul %16, %17, %cst_14 {dimension_numbers = #tpu.dot_dimension_numbers<[1], [0], [0], [1], [0, 0, 1, 1], [], []>} : vector<16x128xbf16>, vector<128x128xbf16>, vector<16x128xf32> -> vector<16x128xf32>
    %c0_15 = arith.constant 0 : index
    %c0_16 = arith.constant 0 : index
    %19 = vector.load %arg7[%c0_15, %c0_16] : memref<1x128xf32, #tpu.memory_space<vmem>>, vector<1x128xf32>
    %20 = vector.broadcast %19 : vector<1x128xf32> to vector<16x128xf32>
    %21 = arith.addf %18, %20 : vector<16x128xf32>
    %c0_17 = arith.constant 0 : index
    %c0_18 = arith.constant 0 : index
    %22 = vector.load %arg8[%c0_17, %c0_18] : memref<16x128xf32, #tpu.memory_space<vmem>>, vector<16x128xf32>
    tpu.vector_store %arg8[%c0_17, %c0_18], %21 {strides = array<i32>} : memref<16x128xf32, #tpu.memory_space<vmem>>, vector<16x128xf32>,
    return
  }
  func.func @transform_0(%arg0: i32) -> (i32, i32) {
    %c0_i32 = arith.constant 0 : i32
    %c0_i32_0 = arith.constant 0 : i32
    return %arg0, %c0_i32 : i32, i32
  }
  func.func @transform_1(%arg0: i32) -> (i32, i32) {
    %c0_i32 = arith.constant 0 : i32
    %c0_i32_0 = arith.constant 0 : i32
    %c0_i32_1 = arith.constant 0 : i32
    return %c0_i32, %c0_i32_0 : i32, i32
  }
  func.func @transform_2(%arg0: i32) -> (i32, i32) {
    %c0_i32 = arith.constant 0 : i32
    %c0_i32_0 = arith.constant 0 : i32
    %c0_i32_1 = arith.constant 0 : i32
    return %c0_i32, %c0_i32_0 : i32, i32
  }
  func.func @transform_3(%arg0: i32) -> (i32, i32) {
    %c0_i32 = arith.constant 0 : i32
    %c0_i32_0 = arith.constant 0 : i32
    %c0_i32_1 = arith.constant 0 : i32
    return %c0_i32, %c0_i32_0 : i32, i32
  }
  func.func @transform_4(%arg0: i32) -> (i32, i32) {
    %c0_i32 = arith.constant 0 : i32
    %c0_i32_0 = arith.constant 0 : i32
    %c0_i32_1 = arith.constant 0 : i32
    return %c0_i32, %c0_i32_0 : i32, i32
  }
  func.func @transform_5(%arg0: i32) -> (i32, i32) {
    %c0_i32 = arith.constant 0 : i32
    %c0_i32_0 = arith.constant 0 : i32
    %c0_i32_1 = arith.constant 0 : i32
    return %c0_i32, %c0_i32_0 : i32, i32
  }
  func.func @transform_6(%arg0: i32) -> (i32, i32) {
    %c0_i32 = arith.constant 0 : i32
    %c0_i32_0 = arith.constant 0 : i32
    %c0_i32_1 = arith.constant 0 : i32
    return %c0_i32, %c0_i32_0 : i32, i32
  }
  func.func @transform_7(%arg0: i32) -> (i32, i32) {
    %c0_i32 = arith.constant 0 : i32
    %c0_i32_0 = arith.constant 0 : i32
    return %arg0, %c0_i32 : i32, i32
  }
}

</mosaic_0001>

<bundles_post_ra>
// kernel: tpu_custom_call.1
= control target key start
LH: loop header
LB: loop body
LE: loop exit
PB: predicated region body
PF: predicated region fallthrough
CT: control target
= control target key end

     0   :  { %12 = vsyncpa [#allocation3], 0  ;;  %s6430_s0 = inlined_call_operand.hbm [shape: bf16[16,2048], index: 0, kind: input, shape index: {}]   ;;  %s6431_s1 = inlined_call_operand.hbm [shape: bf16[2048,512], index: 1, kind: input, shape index: {}]   ;;  %s6432_s2 = inlined_call_operand.hbm [shape: f32[1,512], index: 2, kind: input, shape index: {}]   ;;  %s6433_s3 = inlined_call_operand.hbm [shape: bf16[512,128], index: 3, kind: input, shape index: {}]   ;;  %s6434_s4 = inlined_call_operand.hbm [shape: f32[1,128], index: 4, kind: input, shape index: {}]   ;;  %s6435_s5 = inlined_call_operand.hbm [shape: bf16[128,128], index: 5, kind: input, shape index: {}]   ;;  %s6436_s6 = inlined_call_operand.hbm [shape: f32[1,128], index: 6, kind: input, shape index: {}]   ;;  %s6437_s7 = inlined_call_operand.hbm [shape: f32[16,128], index: 7, kind: output, shape index: {}]  }
   0x1   :  { %13 = vsyncpa [#allocation6], 0 }
   0x2   :  { %14 = vsyncpa [#allocation9], 0 }
   0x3   :  { %15 = vsyncpa [#allocation12], 0 }
   0x4   :  { %16 = vsyncpa [#allocation4], 0  ;;  %s6207_s24 = smov [#allocation5]   ;;  %s6021_s28 = scalar_lea.hbm %s6431_s1, 65536 }
   0x5   :  { %s34_s25 = sshll.u32 %s6207_s24, 4  ;;  %p6022_p0 = scmp.ne.s32.totalorder %s6431_s1, %s6021_s28  ;;  %s35_s25 = int_to_ptr.vmem [resolvable:$true] %s34_s25 }
   0x6   :  { %p6025_p1 = scmp.lt.u32.totalorder %s6021_s28, %s6431_s1 }
   0x8   :  { %p6027_p2 = pnand %p6025_p1, %p6022_p0 }
   0xa   :  { %6030 = shalt.err (!%p6027_p2)
}
   0xb   :  { %s6031_s10 = scalar_lea.vmem %s35_s25, 65536  ;;  %p6036_p4 = scmp.lt.s32.totalorder %s35_s25, %s35_s25 }
   0xc   :  { %p6032_p3 = scmp.ne.s32.totalorder %s35_s25, %s6031_s10  ;;  %p6037_p5 = scmp.lt.s32.totalorder %s6031_s10, %s6031_s10 }
   0xe   :  { %p6038_p6 = por %p6037_p5, %p6036_p4 }
  0x10   :  { %p6039_p7 = pnand %p6038_p6, %p6032_p3 }
  0x12   :  { %6042 = shalt.err (!%p6039_p7)
}
  0x13   :  { %s6208_s11 = smov 256   ;;  %s6209_s12 = smov 16  }
  0x14   :  { %40 = dma.hbm_to_vmem [thread:$0]  %s6431_s1, 65536, %s35_s25, [#allocation6], %s6208_s11, %s6208_s11, %s6209_s12  }
  0x15   :  { %s6210_s15 = smov [#allocation8]   ;;  %s6211_s17 = smov [#allocation11]  }
  0x16   :  { %s56_s16 = sshll.u32 %s6210_s15, 4  ;;  %s78_s18 = sshll.u32 %s6211_s17, 4  ;;  %s57_s16 = int_to_ptr.vmem [resolvable:$true] %s56_s16  ;;  %s79_s18 = int_to_ptr.vmem [resolvable:$true] %s78_s18 }
  0x17   :  { %s6043_s21 = scalar_lea.hbm %s6433_s3, 4096 }
  0x18   :  { %p6044_p8 = scmp.ne.s32.totalorder %s6433_s3, %s6043_s21  ;;  %p6047_p9 = scmp.lt.u32.totalorder %s6043_s21, %s6433_s3 }
  0x1a   :  { %p6049_p10 = pnand %p6047_p9, %p6044_p8 }
  0x1c   :  { %6052 = shalt.err (!%p6049_p10)
}
  0x1d   :  { %s6053_s1 = scalar_lea.vmem %s57_s16, 4096  ;;  %p6058_p12 = scmp.lt.s32.totalorder %s57_s16, %s57_s16 }
  0x1e   :  { %p6054_p11 = scmp.ne.s32.totalorder %s57_s16, %s6053_s1  ;;  %p6059_p13 = scmp.lt.s32.totalorder %s6053_s1, %s6053_s1 }
  0x20   :  { %p6060_p0 = por %p6059_p13, %p6058_p12 }
  0x22   :  { %p6061_p1 = pnand %p6060_p0, %p6054_p11 }
  0x24   :  { %6064 = shalt.err (!%p6061_p1)
}
  0x25   :  { %s6212_s25 = smov 64   ;;  %s6213_s27 = smov 4  }
  0x26   :  { %62 = dma.hbm_to_vmem [thread:$0]  %s6433_s3, 4096, %s57_s16, [#allocation9], %s6212_s25, %s6212_s25, %s6213_s27  }
  0x27   :  { %s6065_s9 = scalar_lea.hbm %s6435_s5, 1024 }
  0x28   :  { %p6066_p2 = scmp.ne.s32.totalorder %s6435_s5, %s6065_s9  ;;  %p6069_p3 = scmp.lt.u32.totalorder %s6065_s9, %s6435_s5 }
  0x2a   :  { %p6071_p4 = pnand %p6069_p3, %p6066_p2 }
  0x2c   :  { %6074 = shalt.err (!%p6071_p4)
}
  0x2d   :  { %s6075_s14 = scalar_lea.vmem %s79_s18, 1024  ;;  %p6080_p6 = scmp.lt.s32.totalorder %s79_s18, %s79_s18 }
  0x2e   :  { %p6076_p5 = scmp.ne.s32.totalorder %s79_s18, %s6075_s14  ;;  %p6081_p7 = scmp.lt.s32.totalorder %s6075_s14, %s6075_s14 }
  0x30   :  { %p6082_p8 = por %p6081_p7, %p6080_p6 }
  0x32   :  { %p6083_p9 = pnand %p6082_p8, %p6076_p5 }
  0x34   :  { %6086 = shalt.err (!%p6083_p9)
}
  0x35   :  { %84 = dma.hbm_to_vmem [thread:$0]  %s6435_s5, 1024, %s79_s18, [#allocation12], %s6212_s25, %s6212_s25, %s6213_s27  }
  0x36   :  { %s6214_s16 = smov [#allocation2]   ;;  %s6087_s21 = scalar_lea.hbm %s6430_s0, 2048 }
  0x37   :  { %s22_s17 = sshll.u32 %s6214_s16, 4  ;;  %p6088_p10 = scmp.ne.s32.totalorder %s6430_s0, %s6087_s21  ;;  %s23_s17 = int_to_ptr.vmem [resolvable:$true] %s22_s17 }
  0x38   :  { %p6091_p11 = scmp.lt.u32.totalorder %s6087_s21, %s6430_s0 }
  0x3a   :  { %p6093_p12 = pnand %p6091_p11, %p6088_p10 }
  0x3c   :  { %6096 = shalt.err (!%p6093_p12)
}
  0x3d   :  { %s6097_s1 = scalar_lea.vmem %s23_s17, 2048  ;;  %p6102_p0 = scmp.lt.s32.totalorder %s23_s17, %s23_s17 }
  0x3e   :  { %p6098_p13 = scmp.ne.s32.totalorder %s23_s17, %s6097_s1  ;;  %p6103_p1 = scmp.lt.s32.totalorder %s6097_s1, %s6097_s1 }
  0x40   :  { %p6104_p2 = por %p6103_p1, %p6102_p0 }
  0x42   :  { %p6105_p3 = pnand %p6104_p2, %p6098_p13 }
  0x44   :  { %6108 = shalt.err (!%p6105_p3)
}
  0x45   :  { %s6215_s5 = smov 1024   ;;  %s6216_s28 = smov [#allocation7]  }
  0x46   :  { %28 = dma.hbm_to_vmem [thread:$0]  %s6430_s0, 2048, %s23_s17, [#allocation3], %s6215_s5, %s6215_s5, %s6212_s25  }
  0x47   :  { %s47_s29 = sshll.u32 %s6216_s28, 4  ;;  %s6217_s30 = smov [#allocation10]   ;;  %s48_s29 = int_to_ptr.vmem [resolvable:$true] %s47_s29 }
  0x48   :  { %s69_s8 = sshll.u32 %s6217_s30, 4  ;;  %s6109_s11 = scalar_lea.hbm %s6432_s2, 64  ;;  %s70_s8 = int_to_ptr.vmem [resolvable:$true] %s69_s8 }
  0x49   :  { %p6110_p4 = scmp.ne.s32.totalorder %s6432_s2, %s6109_s11  ;;  %p6113_p5 = scmp.lt.u32.totalorder %s6109_s11, %s6432_s2 }
  0x4b   :  { %p6115_p6 = pnand %p6113_p5, %p6110_p4 }
  0x4d   :  { %6118 = shalt.err (!%p6115_p6)
}
  0x4e   :  { %s6119_s0 = scalar_lea.vmem %s48_s29, 64  ;;  %p6124_p8 = scmp.lt.s32.totalorder %s48_s29, %s48_s29 }
  0x4f   :  { %p6120_p7 = scmp.ne.s32.totalorder %s48_s29, %s6119_s0  ;;  %p6125_p9 = scmp.lt.s32.totalorder %s6119_s0, %s6119_s0 }
  0x51   :  { %p6126_p10 = por %p6125_p9, %p6124_p8 }
  0x53   :  { %p6127_p11 = pnand %p6126_p10, %p6120_p7 }
  0x55   :  { %6130 = shalt.err (!%p6127_p11)
}
  0x56   :  { %50 = dma.hbm_to_vmem [thread:$0]  %s6432_s2, 64, %s48_s29, [#allocation6]  }
  0x57   :  { %s6131_s19 = scalar_lea.hbm %s6434_s4, 16 }
  0x58   :  { %p6132_p12 = scmp.ne.s32.totalorder %s6434_s4, %s6131_s19  ;;  %p6135_p13 = scmp.lt.u32.totalorder %s6131_s19, %s6434_s4 }
  0x5a   :  { %p6137_p0 = pnand %p6135_p13, %p6132_p12 }
  0x5c   :  { %6140 = shalt.err (!%p6137_p0)
}
  0x5d   :  { %s6141_s24 = scalar_lea.vmem %s70_s8, 16  ;;  %s6145_s26 = scalar_lea.vmem %s70_s8, 32 }
  0x5e   :  { %p6142_p1 = scmp.ne.s32.totalorder %s70_s8, %s6141_s24  ;;  %p6146_p2 = scmp.lt.s32.totalorder %s70_s8, %s70_s8 }
  0x5f   :  { %p6147_p3 = scmp.lt.s32.totalorder %s6145_s26, %s6141_s24 }
  0x61   :  { %p6148_p4 = por %p6147_p3, %p6146_p2 }
  0x63   :  { %p6149_p5 = pnand %p6148_p4, %p6142_p1 }
  0x65   :  { %6152 = shalt.err (!%p6149_p5)
}
  0x66   :  { %72 = dma.hbm_to_vmem [thread:$0]  %s6434_s4, 16, %s70_s8, [#allocation9]  }
  0x67   :  { %s6218_s5 = smov [#allocation13]   ;;  %s6153_s29 = scalar_lea.hbm %s6436_s6, 16 }
  0x68   :  { %s91_s18 = sshll.u32 %s6218_s5, 4  ;;  %p6154_p6 = scmp.ne.s32.totalorder %s6436_s6, %s6153_s29  ;;  %s92_s18 = int_to_ptr.vmem [resolvable:$true] %s91_s18 }
  0x69   :  { %p6157_p7 = scmp.lt.u32.totalorder %s6153_s29, %s6436_s6 }
  0x6b   :  { %p6159_p8 = pnand %p6157_p7, %p6154_p6 }
  0x6d   :  { %6162 = shalt.err (!%p6159_p8)
}
  0x6e   :  { %s6163_s12 = scalar_lea.vmem %s92_s18, 16  ;;  %s6167_s4 = scalar_lea.vmem %s92_s18, 32 }
  0x6f   :  { %p6164_p9 = scmp.ne.s32.totalorder %s92_s18, %s6163_s12  ;;  %p6168_p10 = scmp.lt.s32.totalorder %s92_s18, %s92_s18 }
  0x70   :  { %p6169_p11 = scmp.lt.s32.totalorder %s6167_s4, %s6163_s12 }
  0x72   :  { %p6170_p12 = por %p6169_p11, %p6168_p10 }
  0x74   :  { %p6171_p13 = pnand %p6170_p12, %p6164_p9 }
  0x76   :  { %6174 = shalt.err (!%p6171_p13)
}
  0x77   :  { %94 = dma.hbm_to_vmem [thread:$0]  %s6436_s6, 16, %s92_s18, [#allocation12]  }
  0x78   :  { %6197 = dma.done.wait [#allocation3], 2048  }
  0x79   :  { %6198 = vsyncadd [#allocation3], 4294965248 }
  0x7a   :  { %6199 = dma.done.wait [#allocation6], 65600  }
  0x7b   :  { %6200 = vsyncadd [#allocation6], 4294901696 }
  0x7c   :  { %6201 = dma.done.wait [#allocation9], 4112  }
  0x7d   :  { %6202 = vsyncadd [#allocation9], 4294963184 }
  0x7e   :  { %6203 = dma.done.wait [#allocation12], 1040  }
  0x7f   :  { %6204 = vsyncadd [#allocation12], 4294966256  ;;  %v5213_v0 = vld [vmem:[#allocation5 + $0x4] ss:$16 sps:$4 sm:$0xff]   ;;  %v5215_v1 = vld [vmem:[#allocation5 + $0xc] ss:$16 sps:$4 sm:$0xff]  }
  0x80   :  { %3307 = vmatprep.subr.bf16.mxu0 %v5213_v0  ;;  %v5217_v2 = vld [vmem:[#allocation5] ss:$16 sps:$4 sm:$0xff]   ;;  %v5218_v3 = vld [vmem:[#allocation5 + $0x8] ss:$16 sps:$4 sm:$0xff]   ;;  %3651 = vmatprep.subr.bf16.mxu1 %v5215_v1  ;;  %v5219_v4 = vld [vmem:[#allocation5 + $0x24] ss:$16 sps:$4 sm:$0xff]  }
  0x81   :  { %3308 = vmatpush1.bf16.msra.mxu0 %v5217_v2  ;;  %3652 = vmatpush1.bf16.msra.mxu1 %v5218_v3  ;;  %v5221_v5 = vld [vmem:[#allocation5 + $0x2c] ss:$16 sps:$4 sm:$0xff]   ;;  %v5223_v6 = vld [vmem:[#allocation5 + $0x20] ss:$16 sps:$4 sm:$0xff]   ;;  %v5224_v7 = vld [vmem:[#allocation5 + $0x28] ss:$16 sps:$4 sm:$0xff]  }
  0x82   :  { %3309 = vmatprep.subr.bf16.mxu0 %v5219_v4  ;;  %3653 = vmatprep.subr.bf16.mxu1 %v5221_v5  ;;  %v5225_v8 = vld [vmem:[#allocation5 + $0x44] ss:$16 sps:$4 sm:$0xff]   ;;  %v5227_v9 = vld [vmem:[#allocation5 + $0x4c] ss:$16 sps:$4 sm:$0xff]   ;;  %v5229_v10 = vld [vmem:[#allocation5 + $0x40] ss:$16 sps:$4 sm:$0xff]  }
  0x83   :  { %v5230_v11 = vld [vmem:[#allocation5 + $0x48] ss:$16 sps:$4 sm:$0xff]   ;;  %v5231_v12 = vld [vmem:[#allocation5 + $0x64] ss:$16 sps:$4 sm:$0xff]   ;;  %v5233_v13 = vld [vmem:[#allocation5 + $0x6c] ss:$16 sps:$4 sm:$0xff]  }
  0x84   :  { %v5235_v14 = vld [vmem:[#allocation5 + $0x60] ss:$16 sps:$4 sm:$0xff]   ;;  %v5236_v15 = vld [vmem:[#allocation5 + $0x68] ss:$16 sps:$4 sm:$0xff]   ;;  %v5237_v16 = vld [vmem:[#allocation5 + $0x84] ss:$16 sps:$4 sm:$0xff]  }
  0x85   :  { %3310 = vmatpush1.bf16.msra.mxu0 %v5223_v6  ;;  %3654 = vmatpush1.bf16.msra.mxu1 %v5224_v7  ;;  %v5239_v17 = vld [vmem:[#allocation5 + $0x8c] ss:$16 sps:$4 sm:$0xff]   ;;  %v5241_v18 = vld [vmem:[#allocation5 + $0x80] ss:$16 sps:$4 sm:$0xff]   ;;  %v5242_v19 = vld [vmem:[#allocation5 + $0x88] ss:$16 sps:$4 sm:$0xff]  }
  0x86   :  { %3311 = vmatprep.subr.bf16.mxu0 %v5225_v8  ;;  %3655 = vmatprep.subr.bf16.mxu1 %v5227_v9  ;;  %v5243_v20 = vld [vmem:[#allocation5 + $0xa4] ss:$16 sps:$4 sm:$0xff]   ;;  %v5245_v21 = vld [vmem:[#allocation5 + $0xac] ss:$16 sps:$4 sm:$0xff]   ;;  %v5247_v22 = vld [vmem:[#allocation5 + $0xa0] ss:$16 sps:$4 sm:$0xff]  }
  0x87   :  { %v5248_v23 = vld [vmem:[#allocation5 + $0xa8] ss:$16 sps:$4 sm:$0xff]   ;;  %v5249_v24 = vld [vmem:[#allocation5 + $0xc4] ss:$16 sps:$4 sm:$0xff]   ;;  %v5251_v25 = vld [vmem:[#allocation5 + $0xcc] ss:$16 sps:$4 sm:$0xff]  }
  0x88   :  { %v5253_v26 = vld [vmem:[#allocation5 + $0xc0] ss:$16 sps:$4 sm:$0xff]   ;;  %v5254_v27 = vld [vmem:[#allocation5 + $0xc8] ss:$16 sps:$4 sm:$0xff]   ;;  %v5255_v28 = vld [vmem:[#allocation5 + $0xe4] ss:$16 sps:$4 sm:$0xff]  }
  0x89   :  { %3312 = vmatpush1.bf16.msra.mxu0 %v5229_v10  ;;  %3656 = vmatpush1.bf16.msra.mxu1 %v5230_v11  ;;  %v5257_v29 = vld [vmem:[#allocation5 + $0xec] ss:$16 sps:$4 sm:$0xff]   ;;  %v5259_v30 = vld [vmem:[#allocation5 + $0xe0] ss:$16 sps:$4 sm:$0xff]   ;;  %v5260_v31 = vld [vmem:[#allocation5 + $0xe8] ss:$16 sps:$4 sm:$0xff]  }
  0x8a   :  { %3313 = vmatprep.subr.bf16.mxu0 %v5231_v12  ;;  %3657 = vmatprep.subr.bf16.mxu1 %v5233_v13  ;;  %v5261_v32 = vld [vmem:[#allocation5 + $0x104] ss:$16 sps:$4 sm:$0xff]   ;;  %v5263_v33 = vld [vmem:[#allocation5 + $0x10c] ss:$16 sps:$4 sm:$0xff]   ;;  %v5265_v34 = vld [vmem:[#allocation5 + $0x100] ss:$16 sps:$4 sm:$0xff]  }
  0x8b   :  { %v5266_v35 = vld [vmem:[#allocation5 + $0x108] ss:$16 sps:$4 sm:$0xff]   ;;  %v5267_v36 = vld [vmem:[#allocation5 + $0x124] ss:$16 sps:$4 sm:$0xff]   ;;  %v5269_v37 = vld [vmem:[#allocation5 + $0x12c] ss:$16 sps:$4 sm:$0xff]  }
  0x8c   :  { %v5271_v38 = vld [vmem:[#allocation5 + $0x120] ss:$16 sps:$4 sm:$0xff]   ;;  %v5272_v39 = vld [vmem:[#allocation5 + $0x128] ss:$16 sps:$4 sm:$0xff]   ;;  %v5273_v40 = vld [vmem:[#allocation5 + $0x144] ss:$16 sps:$4 sm:$0xff]  }
  0x8d   :  { %3314 = vmatpush1.bf16.msra.mxu0 %v5235_v14  ;;  %3658 = vmatpush1.bf16.msra.mxu1 %v5236_v15  ;;  %v5275_v41 = vld [vmem:[#allocation5 + $0x14c] ss:$16 sps:$4 sm:$0xff]   ;;  %v5277_v42 = vld [vmem:[#allocation5 + $0x140] ss:$16 sps:$4 sm:$0xff]   ;;  %v5278_v43 = vld [vmem:[#allocation5 + $0x148] ss:$16 sps:$4 sm:$0xff]  }
  0x8e   :  { %3315 = vmatprep.subr.bf16.mxu0 %v5237_v16  ;;  %3659 = vmatprep.subr.bf16.mxu1 %v5239_v17  ;;  %v5279_v44 = vld [vmem:[#allocation5 + $0x164] ss:$16 sps:$4 sm:$0xff]   ;;  %v5281_v45 = vld [vmem:[#allocation5 + $0x16c] ss:$16 sps:$4 sm:$0xff]   ;;  %v5283_v48 = vld [vmem:[#allocation5 + $0x160] ss:$16 sps:$4 sm:$0xff]  }
  0x8f   :  { %v117_v46 = vld [vmem:[#allocation2] sm:$0xff]  ;;  %v5284_v49 = vld [vmem:[#allocation5 + $0x168] ss:$16 sps:$4 sm:$0xff]   ;;  %v5287_v52 = vld [vmem:[#allocation5 + $0x18c] ss:$16 sps:$4 sm:$0xff]   ;;  %vm6220_vm0 = vmmov 0  }
  0x90   :  { %v125_v47 = vld [vmem:[#allocation2 + $0x40] sm:$0xff]  ;;  %v5290_v54 = vld [vmem:[#allocation5 + $0x188] ss:$16 sps:$4 sm:$0xff]   ;;  %v5293_v56 = vld [vmem:[#allocation5 + $0x1ac] ss:$16 sps:$4 sm:$0xff]   ;;  %s6221_s6 = smov [#allocation14]  }
  0x91   :  { %3316 = vmatpush1.bf16.msra.mxu0 %v5241_v18  ;;  %3660 = vmatpush1.bf16.msra.mxu1 %v5242_v19  ;;  %v4490_v50 = vcombine.high %v117_v46, %v125_v47  ;;  %v5285_v51 = vld [vmem:[#allocation5 + $0x184] ss:$16 sps:$4 sm:$0xff]   ;;  %v5289_v53 = vld [vmem:[#allocation5 + $0x180] ss:$16 sps:$4 sm:$0xff]   ;;  %v5296_v58 = vld [vmem:[#allocation5 + $0x1a8] ss:$16 sps:$4 sm:$0xff]   ;;  %v4489_v5 = vcombine.low %v117_v46, %v125_v47 }
  0x92   :  { %3317 = vmatprep.subr.bf16.mxu0 %v5243_v20  ;;  %3661 = vmatprep.subr.bf16.mxu1 %v5245_v21  ;;  %v5291_v55 = vld [vmem:[#allocation5 + $0x1a4] ss:$16 sps:$4 sm:$0xff]   ;;  %v5295_v57 = vld [vmem:[#allocation5 + $0x1a0] ss:$16 sps:$4 sm:$0xff]   ;;  %v5299_v60 = vld [vmem:[#allocation5 + $0x1cc] ss:$16 sps:$4 sm:$0xff]  }
  0x93   :  { %3339 = vmatprep.mubr.bf16.mxu0 %v4490_v50  ;;  %3683 = vmatprep.mubr.bf16.mxu1 %v4490_v50  ;;  %v5297_v59 = vld [vmem:[#allocation5 + $0x1c4] ss:$16 sps:$4 sm:$0xff]   ;;  %v5301_v61 = vld [vmem:[#allocation5 + $0x1c0] ss:$16 sps:$4 sm:$0xff]   ;;  %v5302_v62 = vld [vmem:[#allocation5 + $0x1c8] ss:$16 sps:$4 sm:$0xff]  }
  0x94   :  { %v5303_v63 = vld [vmem:[#allocation5 + $0x1e4] ss:$16 sps:$4 sm:$0xff]   ;;  %v5305_v0 = vld [vmem:[#allocation5 + $0x1ec] ss:$16 sps:$4 sm:$0xff]   ;;  %v5307_v1 = vld [vmem:[#allocation5 + $0x1e0] ss:$16 sps:$4 sm:$0xff]  }
  0x95   :  { %3318 = vmatpush1.bf16.msra.mxu0 %v5247_v22  ;;  %3662 = vmatpush1.bf16.msra.mxu1 %v5248_v23  ;;  %v5308_v2 = vld [vmem:[#allocation5 + $0x1e8] ss:$16 sps:$4 sm:$0xff]   ;;  %v5311_v3 = vld [vmem:[#allocation5 + $0x204] ss:$16 sps:$4 sm:$0xff]   ;;  %v5314_v4 = vld [vmem:[#allocation5 + $0x20c] ss:$16 sps:$4 sm:$0xff]  }
  0x96   :  { %3319 = vmatprep.subr.bf16.mxu0 %v5249_v24  ;;  %3663 = vmatprep.subr.bf16.mxu1 %v5251_v25  ;;  %v5309_v6 = vld [vmem:[#allocation5 + $0x200] ss:$16 sps:$4 sm:$0xff]   ;;  %v5312_v7 = vld [vmem:[#allocation5 + $0x208] ss:$16 sps:$4 sm:$0xff]   ;;  %v5317_v8 = vld [vmem:[#allocation5 + $0x224] ss:$16 sps:$4 sm:$0xff]  }
  0x97   :  { %v5320_v9 = vld [vmem:[#allocation5 + $0x22c] ss:$16 sps:$4 sm:$0xff]   ;;  %v5315_v10 = vld [vmem:[#allocation5 + $0x220] ss:$16 sps:$4 sm:$0xff]   ;;  %v5318_v11 = vld [vmem:[#allocation5 + $0x228] ss:$16 sps:$4 sm:$0xff]  }
  0x98   :  { %v5323_v12 = vld [vmem:[#allocation5 + $0x244] ss:$16 sps:$4 sm:$0xff]   ;;  %v5326_v13 = vld [vmem:[#allocation5 + $0x24c] ss:$16 sps:$4 sm:$0xff]   ;;  %v5321_v14 = vld [vmem:[#allocation5 + $0x240] ss:$16 sps:$4 sm:$0xff]  }
  0x99   :  { %3320 = vmatpush1.bf16.msra.mxu0 %v5253_v26  ;;  %3664 = vmatpush1.bf16.msra.mxu1 %v5254_v27  ;;  %v5324_v15 = vld [vmem:[#allocation5 + $0x248] ss:$16 sps:$4 sm:$0xff]   ;;  %v5329_v16 = vld [vmem:[#allocation5 + $0x264] ss:$16 sps:$4 sm:$0xff]   ;;  %v5332_v17 = vld [vmem:[#allocation5 + $0x26c] ss:$16 sps:$4 sm:$0xff]  }
  0x9a   :  { %3321 = vmatprep.subr.bf16.mxu0 %v5255_v28  ;;  %3665 = vmatprep.subr.bf16.mxu1 %v5257_v29  ;;  %v5327_v18 = vld [vmem:[#allocation5 + $0x260] ss:$16 sps:$4 sm:$0xff]   ;;  %v5330_v19 = vld [vmem:[#allocation5 + $0x268] ss:$16 sps:$4 sm:$0xff]   ;;  %v5335_v20 = vld [vmem:[#allocation5 + $0x284] ss:$16 sps:$4 sm:$0xff]  }
  0x9b   :  { %v5338_v21 = vld [vmem:[#allocation5 + $0x28c] ss:$16 sps:$4 sm:$0xff]   ;;  %v5333_v22 = vld [vmem:[#allocation5 + $0x280] ss:$16 sps:$4 sm:$0xff]   ;;  %v5336_v23 = vld [vmem:[#allocation5 + $0x288] ss:$16 sps:$4 sm:$0xff]  }
  0x9c   :  { %v5341_v24 = vld [vmem:[#allocation5 + $0x2a4] ss:$16 sps:$4 sm:$0xff]   ;;  %v5344_v25 = vld [vmem:[#allocation5 + $0x2ac] ss:$16 sps:$4 sm:$0xff]   ;;  %v5339_v26 = vld [vmem:[#allocation5 + $0x2a0] ss:$16 sps:$4 sm:$0xff]  }
  0x9d   :  { %3322 = vmatpush1.bf16.msra.mxu0 %v5259_v30  ;;  %3666 = vmatpush1.bf16.msra.mxu1 %v5260_v31  ;;  %v5342_v27 = vld [vmem:[#allocation5 + $0x2a8] ss:$16 sps:$4 sm:$0xff]   ;;  %v5347_v28 = vld [vmem:[#allocation5 + $0x2c4] ss:$16 sps:$4 sm:$0xff]   ;;  %v5350_v29 = vld [vmem:[#allocation5 + $0x2cc] ss:$16 sps:$4 sm:$0xff]  }
  0x9e   :  { %3323 = vmatprep.subr.bf16.mxu0 %v5261_v32  ;;  %3667 = vmatprep.subr.bf16.mxu1 %v5263_v33  ;;  %v6353_v30 = vld [vmem:[#allocation2 + $0x8] sm:$0xff]  ;;  %v5345_v32 = vld [vmem:[#allocation5 + $0x2c0] ss:$16 sps:$4 sm:$0xff]   ;;  %v5371_v47 = vld [vmem:[#allocation5 + $0x344] ss:$16 sps:$4 sm:$0xff]   ;;  %s4474_s14 = sshll.u32 %s6221_s6, 4  ;;  %s4475_s14 = int_to_ptr.vmem [resolvable:$true] %s4474_s14 }
  0x9f   :  { %v6355_v31 = vld [vmem:[#allocation2 + $0x48] sm:$0xff]  ;;  %s6175_s3 = scalar_lea.vmem %s4475_s14, 256  ;;  %p6180_p1 = scmp.lt.s32.totalorder %s4475_s14, %s4475_s14 }
  0xa0   :  { %v5348_v33 = vld [vmem:[#allocation5 + $0x2c8] ss:$16 sps:$4 sm:$0xff]   ;;  %p6176_p0 = scmp.ne.s32.totalorder %s4475_s14, %s6175_s3  ;;  %p6181_p2 = scmp.lt.s32.totalorder %s6175_s3, %s6175_s3 }
  0xa1   :  { %3324 = vmatpush1.bf16.msra.mxu0 %v5265_v34  ;;  %3668 = vmatpush1.bf16.msra.mxu1 %v5266_v35  ;;  %v4492_v34 = vcombine.high %v6353_v30, %v6355_v31  ;;  %v5353_v35 = vld [vmem:[#allocation5 + $0x2e4] ss:$16 sps:$4 sm:$0xff]   ;;  %v5366_v46 = vld [vmem:[#allocation5 + $0x328] ss:$16 sps:$4 sm:$0xff]  }
  0xa2   :  { %3325 = vmatprep.subr.bf16.mxu0 %v5267_v36  ;;  %3669 = vmatprep.subr.bf16.mxu1 %v5269_v37  ;;  %v5356_v36 = vld [vmem:[#allocation5 + $0x2ec] ss:$16 sps:$4 sm:$0xff]   ;;  %v5351_v37 = vld [vmem:[#allocation5 + $0x2e0] ss:$16 sps:$4 sm:$0xff]   ;;  %v5372_v50 = vld [vmem:[#allocation5 + $0x348] ss:$16 sps:$4 sm:$0xff]   ;;  %p6182_p3 = por %p6181_p2, %p6180_p1 }
  0xa4   :  { %p6183_p4 = pnand %p6182_p3, %p6176_p0 }
  0xa5   :  { %3326 = vmatpush1.bf16.msra.mxu0 %v5271_v38  ;;  %3670 = vmatpush1.bf16.msra.mxu1 %v5272_v39  ;;  %v5354_v38 = vld [vmem:[#allocation5 + $0x2e8] ss:$16 sps:$4 sm:$0xff]   ;;  %v5359_v39 = vld [vmem:[#allocation5 + $0x304] ss:$16 sps:$4 sm:$0xff]  }
  0xa6   :  { %3327 = vmatprep.subr.bf16.mxu0 %v5273_v40  ;;  %3671 = vmatprep.subr.bf16.mxu1 %v5275_v41  ;;  %v5362_v40 = vld [vmem:[#allocation5 + $0x30c] ss:$16 sps:$4 sm:$0xff]   ;;  %v5357_v41 = vld [vmem:[#allocation5 + $0x300] ss:$16 sps:$4 sm:$0xff]  }
  0xa9   :  { %3328 = vmatpush1.bf16.msra.mxu0 %v5277_v42  ;;  %3672 = vmatpush1.bf16.msra.mxu1 %v5278_v43  ;;  %v5360_v42 = vld [vmem:[#allocation5 + $0x308] ss:$16 sps:$4 sm:$0xff]   ;;  %v5365_v43 = vld [vmem:[#allocation5 + $0x324] ss:$16 sps:$4 sm:$0xff]  }
  0xaa   :  { %3329 = vmatprep.subr.bf16.mxu0 %v5279_v44  ;;  %3673 = vmatprep.subr.bf16.mxu1 %v5281_v45  ;;  %v5368_v44 = vld [vmem:[#allocation5 + $0x32c] ss:$16 sps:$4 sm:$0xff]   ;;  %v5363_v45 = vld [vmem:[#allocation5 + $0x320] ss:$16 sps:$4 sm:$0xff]  }
  0xad   :  { %3330 = vmatpush1.bf16.msra.mxu0 %v5283_v48  ;;  %3674 = vmatpush1.bf16.msra.mxu1 %v5284_v49  ;;  %v5374_v48 = vld [vmem:[#allocation5 + $0x34c] ss:$16 sps:$4 sm:$0xff]   ;;  %v5369_v49 = vld [vmem:[#allocation5 + $0x340] ss:$16 sps:$4 sm:$0xff]  }
  0xae   :  { %3331 = vmatprep.subr.bf16.mxu0 %v5285_v51  ;;  %3675 = vmatprep.subr.bf16.mxu1 %v5287_v52  ;;  %v5377_v51 = vld [vmem:[#allocation5 + $0x364] ss:$16 sps:$4 sm:$0xff]   ;;  %v5380_v52 = vld [vmem:[#allocation5 + $0x36c] ss:$16 sps:$4 sm:$0xff]  }
  0xb1   :  { %3332 = vmatpush1.bf16.msra.mxu0 %v5289_v53  ;;  %3676 = vmatpush1.bf16.msra.mxu1 %v5290_v54  ;;  %v5375_v53 = vld [vmem:[#allocation5 + $0x360] ss:$16 sps:$4 sm:$0xff]   ;;  %v5378_v54 = vld [vmem:[#allocation5 + $0x368] ss:$16 sps:$4 sm:$0xff]  }
  0xb2   :  { %3333 = vmatprep.subr.bf16.mxu0 %v5291_v55  ;;  %3677 = vmatprep.subr.bf16.mxu1 %v5293_v56  ;;  %v5383_v55 = vld [vmem:[#allocation5 + $0x384] ss:$16 sps:$4 sm:$0xff]   ;;  %v5386_v56 = vld [vmem:[#allocation5 + $0x38c] ss:$16 sps:$4 sm:$0xff]  }
  0xb5   :  { %3334 = vmatpush1.bf16.msra.mxu0 %v5295_v57  ;;  %3678 = vmatpush1.bf16.msra.mxu1 %v5296_v58  ;;  %v5381_v57 = vld [vmem:[#allocation5 + $0x380] ss:$16 sps:$4 sm:$0xff]   ;;  %v5384_v58 = vld [vmem:[#allocation5 + $0x388] ss:$16 sps:$4 sm:$0xff]  }
  0xb6   :  { %3335 = vmatprep.subr.bf16.mxu0 %v5297_v59  ;;  %3679 = vmatprep.subr.bf16.mxu1 %v5299_v60  ;;  %v5389_v59 = vld [vmem:[#allocation5 + $0x3a4] ss:$16 sps:$4 sm:$0xff]   ;;  %v5392_v60 = vld [vmem:[#allocation5 + $0x3ac] ss:$16 sps:$4 sm:$0xff]  }
  0xb9   :  { %3336 = vmatpush1.bf16.msra.mxu0 %v5301_v61  ;;  %3680 = vmatpush1.bf16.msra.mxu1 %v5302_v62  ;;  %v5387_v61 = vld [vmem:[#allocation5 + $0x3a0] ss:$16 sps:$4 sm:$0xff]   ;;  %v5390_v62 = vld [vmem:[#allocation5 + $0x3a8] ss:$16 sps:$4 sm:$0xff]  }
  0xba   :  { %3337 = vmatprep.subr.bf16.mxu0 %v5303_v63  ;;  %3681 = vmatprep.subr.bf16.mxu1 %v5305_v0  ;;  %v5395_v63 = vld [vmem:[#allocation5 + $0x3c4] ss:$16 sps:$4 sm:$0xff]   ;;  %v5398_v0 = vld [vmem:[#allocation5 + $0x3cc] ss:$16 sps:$4 sm:$0xff]  }
  0xbd   :  { %3338 = vmatpush1.bf16.msra.mxu0 %v5307_v1  ;;  %3682 = vmatpush1.bf16.msra.mxu1 %v5308_v2  ;;  %v5393_v1 = vld [vmem:[#allocation5 + $0x3c0] ss:$16 sps:$4 sm:$0xff]   ;;  %v5396_v2 = vld [vmem:[#allocation5 + $0x3c8] ss:$16 sps:$4 sm:$0xff]  }
  0xbe   :  { %3350 = vmatprep.subr.bf16.mxu0 %v5311_v3  ;;  %3694 = vmatprep.subr.bf16.mxu1 %v5314_v4  ;;  %v5401_v3 = vld [vmem:[#allocation5 + $0x3e4] ss:$16 sps:$4 sm:$0xff]   ;;  %v5404_v4 = vld [vmem:[#allocation5 + $0x3ec] ss:$16 sps:$4 sm:$0xff]  }
  0xc0   :  { %3340 = vmatmul.mubr.bf16.vlgmr.msra.gmra.mrb[0].mxu0 %v4489_v5  ;;  %3684 = vmatmul.mubr.bf16.vlgmr.msra.gmra.mrb[0].mxu1 %v4489_v5  ;;  %v5399_v5 = vld [vmem:[#allocation5 + $0x3e0] ss:$16 sps:$4 sm:$0xff]  }
  0xc1   :  { %3351 = vmatpush1.bf16.msra.mxu0 %v5309_v6  ;;  %3695 = vmatpush1.bf16.msra.mxu1 %v5312_v7  ;;  %v5402_v6 = vld [vmem:[#allocation5 + $0x3e8] ss:$16 sps:$4 sm:$0xff]   ;;  %v5407_v7 = vld [vmem:[#allocation5 + $0x404] ss:$16 sps:$4 sm:$0xff]  }
  0xc2   :  { %3352 = vmatprep.subr.bf16.mxu0 %v5317_v8  ;;  %3696 = vmatprep.subr.bf16.mxu1 %v5320_v9  ;;  %v5410_v8 = vld [vmem:[#allocation5 + $0x40c] ss:$16 sps:$4 sm:$0xff]   ;;  %v4491_v9 = vcombine.low %v6353_v30, %v6355_v31  ;;  %v5432_v30 = vld [vmem:[#allocation5 + $0x488] ss:$16 sps:$4 sm:$0xff]   ;;  %v5437_v31 = vld [vmem:[#allocation5 + $0x4a4] ss:$16 sps:$4 sm:$0xff]  }
  0xc3   :  { %3382 = vmatprep.mubr.bf16.mxu0 %v4492_v34  ;;  %3726 = vmatprep.mubr.bf16.mxu1 %v4492_v34  ;;  %v5438_v34 = vld [vmem:[#allocation5 + $0x4a8] ss:$16 sps:$4 sm:$0xff]  }
  0xc5   :  { %3353 = vmatpush1.bf16.msra.mxu0 %v5315_v10  ;;  %3697 = vmatpush1.bf16.msra.mxu1 %v5318_v11  ;;  %v5405_v10 = vld [vmem:[#allocation5 + $0x400] ss:$16 sps:$4 sm:$0xff]   ;;  %v5408_v11 = vld [vmem:[#allocation5 + $0x408] ss:$16 sps:$4 sm:$0xff]  }
  0xc6   :  { %3354 = vmatprep.subr.bf16.mxu0 %v5323_v12  ;;  %3698 = vmatprep.subr.bf16.mxu1 %v5326_v13  ;;  %v5413_v12 = vld [vmem:[#allocation5 + $0x424] ss:$16 sps:$4 sm:$0xff]   ;;  %v5416_v13 = vld [vmem:[#allocation5 + $0x42c] ss:$16 sps:$4 sm:$0xff]  }
  0xc9   :  { %3355 = vmatpush1.bf16.msra.mxu0 %v5321_v14  ;;  %3699 = vmatpush1.bf16.msra.mxu1 %v5324_v15  ;;  %v6361_v14 = vld [vmem:[#allocation2 + $0x10] sm:$0xff] }
  0xca   :  { %3356 = vmatprep.subr.bf16.mxu0 %v5329_v16  ;;  %3700 = vmatprep.subr.bf16.mxu1 %v5332_v17  ;;  %v6363_v15 = vld [vmem:[#allocation2 + $0x50] sm:$0xff] }
  0xcb   :  { %v4494_v16 = vcombine.high %v6361_v14, %v6363_v15  ;;  %v5411_v17 = vld [vmem:[#allocation5 + $0x420] ss:$16 sps:$4 sm:$0xff]  }
  0xcd   :  { %3357 = vmatpush1.bf16.msra.mxu0 %v5327_v18  ;;  %3701 = vmatpush1.bf16.msra.mxu1 %v5330_v19  ;;  %v5414_v18 = vld [vmem:[#allocation5 + $0x428] ss:$16 sps:$4 sm:$0xff]   ;;  %v5419_v19 = vld [vmem:[#allocation5 + $0x444] ss:$16 sps:$4 sm:$0xff]  }
  0xce   :  { %3358 = vmatprep.subr.bf16.mxu0 %v5335_v20  ;;  %3702 = vmatprep.subr.bf16.mxu1 %v5338_v21  ;;  %v5422_v20 = vld [vmem:[#allocation5 + $0x44c] ss:$16 sps:$4 sm:$0xff]   ;;  %v5417_v21 = vld [vmem:[#allocation5 + $0x440] ss:$16 sps:$4 sm:$0xff]  }
  0xd1   :  { %3359 = vmatpush1.bf16.msra.mxu0 %v5333_v22  ;;  %3703 = vmatpush1.bf16.msra.mxu1 %v5336_v23  ;;  %v5420_v22 = vld [vmem:[#allocation5 + $0x448] ss:$16 sps:$4 sm:$0xff]   ;;  %v5425_v23 = vld [vmem:[#allocation5 + $0x464] ss:$16 sps:$4 sm:$0xff]  }
  0xd2   :  { %3360 = vmatprep.subr.bf16.mxu0 %v5341_v24  ;;  %3704 = vmatprep.subr.bf16.mxu1 %v5344_v25  ;;  %v5428_v24 = vld [vmem:[#allocation5 + $0x46c] ss:$16 sps:$4 sm:$0xff]   ;;  %v5423_v25 = vld [vmem:[#allocation5 + $0x460] ss:$16 sps:$4 sm:$0xff]  }
  0xd5   :  { %3361 = vmatpush1.bf16.msra.mxu0 %v5339_v26  ;;  %3705 = vmatpush1.bf16.msra.mxu1 %v5342_v27  ;;  %v5426_v26 = vld [vmem:[#allocation5 + $0x468] ss:$16 sps:$4 sm:$0xff]   ;;  %v5431_v27 = vld [vmem:[#allocation5 + $0x484] ss:$16 sps:$4 sm:$0xff]  }
  0xd6   :  { %3362 = vmatprep.subr.bf16.mxu0 %v5347_v28  ;;  %3706 = vmatprep.subr.bf16.mxu1 %v5350_v29  ;;  %v5434_v28 = vld [vmem:[#allocation5 + $0x48c] ss:$16 sps:$4 sm:$0xff]   ;;  %v5429_v29 = vld [vmem:[#allocation5 + $0x480] ss:$16 sps:$4 sm:$0xff]  }
  0xd9   :  { %3363 = vmatpush1.bf16.msra.mxu0 %v5345_v32  ;;  %3707 = vmatpush1.bf16.msra.mxu1 %v5348_v33  ;;  %v5440_v32 = vld [vmem:[#allocation5 + $0x4ac] ss:$16 sps:$4 sm:$0xff]   ;;  %v5435_v33 = vld [vmem:[#allocation5 + $0x4a0] ss:$16 sps:$4 sm:$0xff]  }
  0xda   :  { %3364 = vmatprep.subr.bf16.mxu0 %v5353_v35  ;;  %3708 = vmatprep.subr.bf16.mxu1 %v5356_v36  ;;  %v5443_v35 = vld [vmem:[#allocation5 + $0x4c4] ss:$16 sps:$4 sm:$0xff]   ;;  %v5446_v36 = vld [vmem:[#allocation5 + $0x4cc] ss:$16 sps:$4 sm:$0xff]  }
  0xdd   :  { %3365 = vmatpush1.bf16.msra.mxu0 %v5351_v37  ;;  %3709 = vmatpush1.bf16.msra.mxu1 %v5354_v38  ;;  %v5441_v37 = vld [vmem:[#allocation5 + $0x4c0] ss:$16 sps:$4 sm:$0xff]   ;;  %v5444_v38 = vld [vmem:[#allocation5 + $0x4c8] ss:$16 sps:$4 sm:$0xff]  }
  0xde   :  { %3366 = vmatprep.subr.bf16.mxu0 %v5359_v39  ;;  %3710 = vmatprep.subr.bf16.mxu1 %v5362_v40  ;;  %v5449_v39 = vld [vmem:[#allocation5 + $0x4e4] ss:$16 sps:$4 sm:$0xff]   ;;  %v5452_v40 = vld [vmem:[#allocation5 + $0x4ec] ss:$16 sps:$4 sm:$0xff]  }
  0xe1   :  { %3367 = vmatpush1.bf16.msra.mxu0 %v5357_v41  ;;  %3711 = vmatpush1.bf16.msra.mxu1 %v5360_v42  ;;  %v5447_v41 = vld [vmem:[#allocation5 + $0x4e0] ss:$16 sps:$4 sm:$0xff]   ;;  %v5450_v42 = vld [vmem:[#allocation5 + $0x4e8] ss:$16 sps:$4 sm:$0xff]  }
  0xe2   :  { %3368 = vmatprep.subr.bf16.mxu0 %v5365_v43  ;;  %3712 = vmatprep.subr.bf16.mxu1 %v5368_v44  ;;  %v5455_v43 = vld [vmem:[#allocation5 + $0x504] ss:$16 sps:$4 sm:$0xff]   ;;  %v5458_v44 = vld [vmem:[#allocation5 + $0x50c] ss:$16 sps:$4 sm:$0xff]  }
  0xe5   :  { %3369 = vmatpush1.bf16.msra.mxu0 %v5363_v45  ;;  %3713 = vmatpush1.bf16.msra.mxu1 %v5366_v46  ;;  %v5453_v45 = vld [vmem:[#allocation5 + $0x500] ss:$16 sps:$4 sm:$0xff]   ;;  %v5456_v46 = vld [vmem:[#allocation5 + $0x508] ss:$16 sps:$4 sm:$0xff]  }
  0xe6   :  { %3370 = vmatprep.subr.bf16.mxu0 %v5371_v47  ;;  %3714 = vmatprep.subr.bf16.mxu1 %v5374_v48  ;;  %v5461_v47 = vld [vmem:[#allocation5 + $0x524] ss:$16 sps:$4 sm:$0xff]   ;;  %v5464_v48 = vld [vmem:[#allocation5 + $0x52c] ss:$16 sps:$4 sm:$0xff]  }
  0xe9   :  { %3371 = vmatpush1.bf16.msra.mxu0 %v5369_v49  ;;  %3715 = vmatpush1.bf16.msra.mxu1 %v5372_v50  ;;  %v5459_v49 = vld [vmem:[#allocation5 + $0x520] ss:$16 sps:$4 sm:$0xff]   ;;  %v5462_v50 = vld [vmem:[#allocation5 + $0x528] ss:$16 sps:$4 sm:$0xff]  }
  0xea   :  { %3372 = vmatprep.subr.bf16.mxu0 %v5377_v51  ;;  %3716 = vmatprep.subr.bf16.mxu1 %v5380_v52  ;;  %v5467_v51 = vld [vmem:[#allocation5 + $0x544] ss:$16 sps:$4 sm:$0xff]   ;;  %v5470_v52 = vld [vmem:[#allocation5 + $0x54c] ss:$16 sps:$4 sm:$0xff]  }
  0xed   :  { %3373 = vmatpush1.bf16.msra.mxu0 %v5375_v53  ;;  %3717 = vmatpush1.bf16.msra.mxu1 %v5378_v54  ;;  %v5465_v53 = vld [vmem:[#allocation5 + $0x540] ss:$16 sps:$4 sm:$0xff]   ;;  %v5468_v54 = vld [vmem:[#allocation5 + $0x548] ss:$16 sps:$4 sm:$0xff]  }
  0xee   :  { %3374 = vmatprep.subr.bf16.mxu0 %v5383_v55  ;;  %3718 = vmatprep.subr.bf16.mxu1 %v5386_v56  ;;  %v5473_v55 = vld [vmem:[#allocation5 + $0x564] ss:$16 sps:$4 sm:$0xff]   ;;  %v5476_v56 = vld [vmem:[#allocation5 + $0x56c] ss:$16 sps:$4 sm:$0xff]  }
  0xf1   :  { %3375 = vmatpush1.bf16.msra.mxu0 %v5381_v57  ;;  %3719 = vmatpush1.bf16.msra.mxu1 %v5384_v58  ;;  %v5471_v57 = vld [vmem:[#allocation5 + $0x560] ss:$16 sps:$4 sm:$0xff]   ;;  %v5474_v58 = vld [vmem:[#allocation5 + $0x568] ss:$16 sps:$4 sm:$0xff]  }
  0xf2   :  { %3376 = vmatprep.subr.bf16.mxu0 %v5389_v59  ;;  %3720 = vmatprep.subr.bf16.mxu1 %v5392_v60  ;;  %v5479_v59 = vld [vmem:[#allocation5 + $0x584] ss:$16 sps:$4 sm:$0xff]   ;;  %v5482_v60 = vld [vmem:[#allocation5 + $0x58c] ss:$16 sps:$4 sm:$0xff]  }
  0xf5   :  { %3377 = vmatpush1.bf16.msra.mxu0 %v5387_v61  ;;  %3721 = vmatpush1.bf16.msra.mxu1 %v5390_v62  ;;  %v5477_v61 = vld [vmem:[#allocation5 + $0x580] ss:$16 sps:$4 sm:$0xff]   ;;  %v5480_v62 = vld [vmem:[#allocation5 + $0x588] ss:$16 sps:$4 sm:$0xff]  }
  0xf6   :  { %3378 = vmatprep.subr.bf16.mxu0 %v5395_v63  ;;  %3722 = vmatprep.subr.bf16.mxu1 %v5398_v0  ;;  %v5485_v63 = vld [vmem:[#allocation5 + $0x5a4] ss:$16 sps:$4 sm:$0xff]   ;;  %v5488_v0 = vld [vmem:[#allocation5 + $0x5ac] ss:$16 sps:$4 sm:$0xff]  }
  0xf9   :  { %3379 = vmatpush1.bf16.msra.mxu0 %v5393_v1  ;;  %3723 = vmatpush1.bf16.msra.mxu1 %v5396_v2  ;;  %v5483_v1 = vld [vmem:[#allocation5 + $0x5a0] ss:$16 sps:$4 sm:$0xff]   ;;  %v5486_v2 = vld [vmem:[#allocation5 + $0x5a8] ss:$16 sps:$4 sm:$0xff]  }
  0xfa   :  { %3380 = vmatprep.subr.bf16.mxu0 %v5401_v3  ;;  %3724 = vmatprep.subr.bf16.mxu1 %v5404_v4  ;;  %v5491_v3 = vld [vmem:[#allocation5 + $0x5c4] ss:$16 sps:$4 sm:$0xff]   ;;  %v5494_v4 = vld [vmem:[#allocation5 + $0x5cc] ss:$16 sps:$4 sm:$0xff]  }
  0xfd   :  { %3381 = vmatpush1.bf16.msra.mxu0 %v5399_v5  ;;  %3725 = vmatpush1.bf16.msra.mxu1 %v5402_v6  ;;  %v5489_v5 = vld [vmem:[#allocation5 + $0x5c0] ss:$16 sps:$4 sm:$0xff]   ;;  %v5492_v6 = vld [vmem:[#allocation5 + $0x5c8] ss:$16 sps:$4 sm:$0xff]  }
  0xfe   :  { %3393 = vmatprep.subr.bf16.mxu0 %v5407_v7  ;;  %3737 = vmatprep.subr.bf16.mxu1 %v5410_v8  ;;  %v5497_v7 = vld [vmem:[#allocation5 + $0x5e4] ss:$16 sps:$4 sm:$0xff]   ;;  %v5500_v8 = vld [vmem:[#allocation5 + $0x5ec] ss:$16 sps:$4 sm:$0xff]  }
 0x100   :  { %3383 = vmatmul.mubr.bf16.vlgmr.msra.gmra.mrb[0].mxu0 %v4491_v9  ;;  %3727 = vmatmul.mubr.bf16.vlgmr.msra.gmra.mrb[0].mxu1 %v4491_v9  ;;  %v5495_v9 = vld [vmem:[#allocation5 + $0x5e0] ss:$16 sps:$4 sm:$0xff]  }
 0x101   :  { %3394 = vmatpush1.bf16.msra.mxu0 %v5405_v10  ;;  %3738 = vmatpush1.bf16.msra.mxu1 %v5408_v11  ;;  %v5498_v10 = vld [vmem:[#allocation5 + $0x5e8] ss:$16 sps:$4 sm:$0xff]   ;;  %v5503_v11 = vld [vmem:[#allocation5 + $0x604] ss:$16 sps:$4 sm:$0xff]  }
 0x102   :  { %3395 = vmatprep.subr.bf16.mxu0 %v5413_v12  ;;  %3739 = vmatprep.subr.bf16.mxu1 %v5416_v13  ;;  %v5506_v12 = vld [vmem:[#allocation5 + $0x60c] ss:$16 sps:$4 sm:$0xff]   ;;  %v5501_v13 = vld [vmem:[#allocation5 + $0x600] ss:$16 sps:$4 sm:$0xff]  }
 0x103   :  { %3425 = vmatprep.mubr.bf16.mxu0 %v4494_v16  ;;  %3769 = vmatprep.mubr.bf16.mxu1 %v4494_v16  ;;  %v5504_v16 = vld [vmem:[#allocation5 + $0x608] ss:$16 sps:$4 sm:$0xff]  }
 0x105   :  { %3396 = vmatpush1.bf16.msra.mxu0 %v5411_v17  ;;  %3740 = vmatpush1.bf16.msra.mxu1 %v5414_v18  ;;  %v4493_v17 = vcombine.low %v6361_v14, %v6363_v15  ;;  %v6369_v18 = vld [vmem:[#allocation2 + $0x18] sm:$0xff]  ;;  %v5515_v14 = vld [vmem:[#allocation5 + $0x644] ss:$16 sps:$4 sm:$0xff]  }
 0x106   :  { %3397 = vmatprep.subr.bf16.mxu0 %v5419_v19  ;;  %3741 = vmatprep.subr.bf16.mxu1 %v5422_v20  ;;  %v6371_v19 = vld [vmem:[#allocation2 + $0x58] sm:$0xff]  ;;  %v5509_v20 = vld [vmem:[#allocation5 + $0x624] ss:$16 sps:$4 sm:$0xff]  }
 0x107   :  { %v5518_v15 = vld [vmem:[#allocation5 + $0x64c] ss:$16 sps:$4 sm:$0xff]  }
 0x109   :  { %3398 = vmatpush1.bf16.msra.mxu0 %v5417_v21  ;;  %3742 = vmatpush1.bf16.msra.mxu1 %v5420_v22  ;;  %v5512_v21 = vld [vmem:[#allocation5 + $0x62c] ss:$16 sps:$4 sm:$0xff]   ;;  %v4496_v22 = vcombine.high %v6369_v18, %v6371_v19 }
 0x10a   :  { %3399 = vmatprep.subr.bf16.mxu0 %v5425_v23  ;;  %3743 = vmatprep.subr.bf16.mxu1 %v5428_v24  ;;  %v5507_v23 = vld [vmem:[#allocation5 + $0x620] ss:$16 sps:$4 sm:$0xff]   ;;  %v5510_v24 = vld [vmem:[#allocation5 + $0x628] ss:$16 sps:$4 sm:$0xff]  }
 0x10d   :  { %3400 = vmatpush1.bf16.msra.mxu0 %v5423_v25  ;;  %3744 = vmatpush1.bf16.msra.mxu1 %v5426_v26  ;;  %v5513_v25 = vld [vmem:[#allocation5 + $0x640] ss:$16 sps:$4 sm:$0xff]   ;;  %v5516_v26 = vld [vmem:[#allocation5 + $0x648] ss:$16 sps:$4 sm:$0xff]  }
 0x10e   :  { %3401 = vmatprep.subr.bf16.mxu0 %v5431_v27  ;;  %3745 = vmatprep.subr.bf16.mxu1 %v5434_v28  ;;  %v5521_v27 = vld [vmem:[#allocation5 + $0x664] ss:$16 sps:$4 sm:$0xff]   ;;  %v5524_v28 = vld [vmem:[#allocation5 + $0x66c] ss:$16 sps:$4 sm:$0xff]  }
 0x111   :  { %3402 = vmatpush1.bf16.msra.mxu0 %v5429_v29  ;;  %3746 = vmatpush1.bf16.msra.mxu1 %v5432_v30  ;;  %v5519_v29 = vld [vmem:[#allocation5 + $0x660] ss:$16 sps:$4 sm:$0xff]   ;;  %v5522_v30 = vld [vmem:[#allocation5 + $0x668] ss:$16 sps:$4 sm:$0xff]  }
 0x112   :  { %3403 = vmatprep.subr.bf16.mxu0 %v5437_v31  ;;  %3747 = vmatprep.subr.bf16.mxu1 %v5440_v32  ;;  %v5527_v31 = vld [vmem:[#allocation5 + $0x684] ss:$16 sps:$4 sm:$0xff]   ;;  %v5530_v32 = vld [vmem:[#allocation5 + $0x68c] ss:$16 sps:$4 sm:$0xff]  }
 0x115   :  { %3404 = vmatpush1.bf16.msra.mxu0 %v5435_v33  ;;  %3748 = vmatpush1.bf16.msra.mxu1 %v5438_v34  ;;  %v5525_v33 = vld [vmem:[#allocation5 + $0x680] ss:$16 sps:$4 sm:$0xff]   ;;  %v5528_v34 = vld [vmem:[#allocation5 + $0x688] ss:$16 sps:$4 sm:$0xff]  }
 0x116   :  { %3405 = vmatprep.subr.bf16.mxu0 %v5443_v35  ;;  %3749 = vmatprep.subr.bf16.mxu1 %v5446_v36  ;;  %v5533_v35 = vld [vmem:[#allocation5 + $0x6a4] ss:$16 sps:$4 sm:$0xff]   ;;  %v5536_v36 = vld [vmem:[#allocation5 + $0x6ac] ss:$16 sps:$4 sm:$0xff]  }
 0x119   :  { %3406 = vmatpush1.bf16.msra.mxu0 %v5441_v37  ;;  %3750 = vmatpush1.bf16.msra.mxu1 %v5444_v38  ;;  %v5531_v37 = vld [vmem:[#allocation5 + $0x6a0] ss:$16 sps:$4 sm:$0xff]   ;;  %v5534_v38 = vld [vmem:[#allocation5 + $0x6a8] ss:$16 sps:$4 sm:$0xff]  }
 0x11a   :  { %3407 = vmatprep.subr.bf16.mxu0 %v5449_v39  ;;  %3751 = vmatprep.subr.bf16.mxu1 %v5452_v40  ;;  %v5539_v39 = vld [vmem:[#allocation5 + $0x6c4] ss:$16 sps:$4 sm:$0xff]   ;;  %v5542_v40 = vld [vmem:[#allocation5 + $0x6cc] ss:$16 sps:$4 sm:$0xff]  }
 0x11d   :  { %3408 = vmatpush1.bf16.msra.mxu0 %v5447_v41  ;;  %3752 = vmatpush1.bf16.msra.mxu1 %v5450_v42  ;;  %v5537_v41 = vld [vmem:[#allocation5 + $0x6c0] ss:$16 sps:$4 sm:$0xff]   ;;  %v5540_v42 = vld [vmem:[#allocation5 + $0x6c8] ss:$16 sps:$4 sm:$0xff]  }
 0x11e   :  { %3409 = vmatprep.subr.bf16.mxu0 %v5455_v43  ;;  %3753 = vmatprep.subr.bf16.mxu1 %v5458_v44  ;;  %v5545_v43 = vld [vmem:[#allocation5 + $0x6e4] ss:$16 sps:$4 sm:$0xff]   ;;  %v5548_v44 = vld [vmem:[#allocation5 + $0x6ec] ss:$16 sps:$4 sm:$0xff]  }
 0x121   :  { %3410 = vmatpush1.bf16.msra.mxu0 %v5453_v45  ;;  %3754 = vmatpush1.bf16.msra.mxu1 %v5456_v46  ;;  %v5543_v45 = vld [vmem:[#allocation5 + $0x6e0] ss:$16 sps:$4 sm:$0xff]   ;;  %v5546_v46 = vld [vmem:[#allocation5 + $0x6e8] ss:$16 sps:$4 sm:$0xff]  }
 0x122   :  { %3411 = vmatprep.subr.bf16.mxu0 %v5461_v47  ;;  %3755 = vmatprep.subr.bf16.mxu1 %v5464_v48  ;;  %v5551_v47 = vld [vmem:[#allocation5 + $0x704] ss:$16 sps:$4 sm:$0xff]   ;;  %v5554_v48 = vld [vmem:[#allocation5 + $0x70c] ss:$16 sps:$4 sm:$0xff]  }
 0x125   :  { %3412 = vmatpush1.bf16.msra.mxu0 %v5459_v49  ;;  %3756 = vmatpush1.bf16.msra.mxu1 %v5462_v50  ;;  %v5549_v49 = vld [vmem:[#allocation5 + $0x700] ss:$16 sps:$4 sm:$0xff]   ;;  %v5552_v50 = vld [vmem:[#allocation5 + $0x708] ss:$16 sps:$4 sm:$0xff]  }
 0x126   :  { %3413 = vmatprep.subr.bf16.mxu0 %v5467_v51  ;;  %3757 = vmatprep.subr.bf16.mxu1 %v5470_v52  ;;  %v5557_v51 = vld [vmem:[#allocation5 + $0x724] ss:$16 sps:$4 sm:$0xff]   ;;  %v5560_v52 = vld [vmem:[#allocation5 + $0x72c] ss:$16 sps:$4 sm:$0xff]  }
 0x129   :  { %3414 = vmatpush1.bf16.msra.mxu0 %v5465_v53  ;;  %3758 = vmatpush1.bf16.msra.mxu1 %v5468_v54  ;;  %v5555_v53 = vld [vmem:[#allocation5 + $0x720] ss:$16 sps:$4 sm:$0xff]   ;;  %v5558_v54 = vld [vmem:[#allocation5 + $0x728] ss:$16 sps:$4 sm:$0xff]  }
 0x12a   :  { %3415 = vmatprep.subr.bf16.mxu0 %v5473_v55  ;;  %3759 = vmatprep.subr.bf16.mxu1 %v5476_v56  ;;  %v5563_v55 = vld [vmem:[#allocation5 + $0x744] ss:$16 sps:$4 sm:$0xff]   ;;  %v5566_v56 = vld [vmem:[#allocation5 + $0x74c] ss:$16 sps:$4 sm:$0xff]  }
 0x12d   :  { %3416 = vmatpush1.bf16.msra.mxu0 %v5471_v57  ;;  %3760 = vmatpush1.bf16.msra.mxu1 %v5474_v58  ;;  %v5561_v57 = vld [vmem:[#allocation5 + $0x740] ss:$16 sps:$4 sm:$0xff]   ;;  %v5564_v58 = vld [vmem:[#allocation5 + $0x748] ss:$16 sps:$4 sm:$0xff]  }
 0x12e   :  { %3417 = vmatprep.subr.bf16.mxu0 %v5479_v59  ;;  %3761 = vmatprep.subr.bf16.mxu1 %v5482_v60  ;;  %v5569_v59 = vld [vmem:[#allocation5 + $0x764] ss:$16 sps:$4 sm:$0xff]   ;;  %v5572_v60 = vld [vmem:[#allocation5 + $0x76c] ss:$16 sps:$4 sm:$0xff]  }
 0x131   :  { %3418 = vmatpush1.bf16.msra.mxu0 %v5477_v61  ;;  %3762 = vmatpush1.bf16.msra.mxu1 %v5480_v62  ;;  %v5567_v61 = vld [vmem:[#allocation5 + $0x760] ss:$16 sps:$4 sm:$0xff]   ;;  %v5570_v62 = vld [vmem:[#allocation5 + $0x768] ss:$16 sps:$4 sm:$0xff]  }
 0x132   :  { %3419 = vmatprep.subr.bf16.mxu0 %v5485_v63  ;;  %3763 = vmatprep.subr.bf16.mxu1 %v5488_v0  ;;  %v5575_v63 = vld [vmem:[#allocation5 + $0x784] ss:$16 sps:$4 sm:$0xff]   ;;  %v5578_v0 = vld [vmem:[#allocation5 + $0x78c] ss:$16 sps:$4 sm:$0xff]  }
 0x135   :  { %3420 = vmatpush1.bf16.msra.mxu0 %v5483_v1  ;;  %3764 = vmatpush1.bf16.msra.mxu1 %v5486_v2  ;;  %v5573_v1 = vld [vmem:[#allocation5 + $0x780] ss:$16 sps:$4 sm:$0xff]   ;;  %v5576_v2 = vld [vmem:[#allocation5 + $0x788] ss:$16 sps:$4 sm:$0xff]  }
 0x136   :  { %3421 = vmatprep.subr.bf16.mxu0 %v5491_v3  ;;  %3765 = vmatprep.subr.bf16.mxu1 %v5494_v4  ;;  %v5581_v3 = vld [vmem:[#allocation5 + $0x7a4] ss:$16 sps:$4 sm:$0xff]   ;;  %v5584_v4 = vld [vmem:[#allocation5 + $0x7ac] ss:$16 sps:$4 sm:$0xff]  }
 0x139   :  { %3422 = vmatpush1.bf16.msra.mxu0 %v5489_v5  ;;  %3766 = vmatpush1.bf16.msra.mxu1 %v5492_v6  ;;  %v5579_v5 = vld [vmem:[#allocation5 + $0x7a0] ss:$16 sps:$4 sm:$0xff]   ;;  %v5582_v6 = vld [vmem:[#allocation5 + $0x7a8] ss:$16 sps:$4 sm:$0xff]  }
 0x13a   :  { %3423 = vmatprep.subr.bf16.mxu0 %v5497_v7  ;;  %3767 = vmatprep.subr.bf16.mxu1 %v5500_v8  ;;  %v5587_v7 = vld [vmem:[#allocation5 + $0x7c4] ss:$16 sps:$4 sm:$0xff]   ;;  %v5590_v8 = vld [vmem:[#allocation5 + $0x7cc] ss:$16 sps:$4 sm:$0xff]  }
 0x13d   :  { %3424 = vmatpush1.bf16.msra.mxu0 %v5495_v9  ;;  %3768 = vmatpush1.bf16.msra.mxu1 %v5498_v10  ;;  %v5585_v9 = vld [vmem:[#allocation5 + $0x7c0] ss:$16 sps:$4 sm:$0xff]   ;;  %v5588_v10 = vld [vmem:[#allocation5 + $0x7c8] ss:$16 sps:$4 sm:$0xff]  }
 0x13e   :  { %3436 = vmatprep.subr.bf16.mxu0 %v5503_v11  ;;  %3780 = vmatprep.subr.bf16.mxu1 %v5506_v12  ;;  %v5593_v11 = vld [vmem:[#allocation5 + $0x7e4] ss:$16 sps:$4 sm:$0xff]   ;;  %v5596_v12 = vld [vmem:[#allocation5 + $0x7ec] ss:$16 sps:$4 sm:$0xff]  }
 0x140   :  { %3426 = vmatmul.mubr.bf16.vlgmr.msra.gmra.mrb[0].mxu0 %v4493_v17  ;;  %3770 = vmatmul.mubr.bf16.vlgmr.msra.gmra.mrb[0].mxu1 %v4493_v17  ;;  %v5599_v17 = vld [vmem:[#allocation5 + $0x804] ss:$16 sps:$4 sm:$0xff]  }
 0x141   :  { %3437 = vmatpush1.bf16.msra.mxu0 %v5501_v13  ;;  %3781 = vmatpush1.bf16.msra.mxu1 %v5504_v16  ;;  %v5591_v13 = vld [vmem:[#allocation5 + $0x7e0] ss:$16 sps:$4 sm:$0xff]   ;;  %v5594_v16 = vld [vmem:[#allocation5 + $0x7e8] ss:$16 sps:$4 sm:$0xff]  }
 0x142   :  { %3438 = vmatprep.subr.bf16.mxu0 %v5509_v20  ;;  %3782 = vmatprep.subr.bf16.mxu1 %v5512_v21  ;;  %v5602_v20 = vld [vmem:[#allocation5 + $0x80c] ss:$16 sps:$4 sm:$0xff]   ;;  %v6375_v21 = vld [vmem:[#allocation2 + $0x20] sm:$0xff] }
 0x143   :  { %3468 = vmatprep.mubr.bf16.mxu0 %v4496_v22  ;;  %3812 = vmatprep.mubr.bf16.mxu1 %v4496_v22  ;;  %v4495_v22 = vcombine.low %v6369_v18, %v6371_v19  ;;  %v5611_v18 = vld [vmem:[#allocation5 + $0x844] ss:$16 sps:$4 sm:$0xff]   ;;  %v5614_v19 = vld [vmem:[#allocation5 + $0x84c] ss:$16 sps:$4 sm:$0xff]  }
 0x145   :  { %3439 = vmatpush1.bf16.msra.mxu0 %v5507_v23  ;;  %3783 = vmatpush1.bf16.msra.mxu1 %v5510_v24  ;;  %v6379_v23 = vld [vmem:[#allocation2 + $0x60] sm:$0xff] }
 0x146   :  { %3440 = vmatprep.subr.bf16.mxu0 %v5515_v14  ;;  %3784 = vmatprep.subr.bf16.mxu1 %v5518_v15  ;;  %v5597_v24 = vld [vmem:[#allocation5 + $0x800] ss:$16 sps:$4 sm:$0xff]   ;;  %v5600_v14 = vld [vmem:[#allocation5 + $0x808] ss:$16 sps:$4 sm:$0xff]   ;;  %v5605_v15 = vld [vmem:[#allocation5 + $0x824] ss:$16 sps:$4 sm:$0xff]  }
 0x149   :  { %3441 = vmatpush1.bf16.msra.mxu0 %v5513_v25  ;;  %3785 = vmatpush1.bf16.msra.mxu1 %v5516_v26  ;;  %v5608_v25 = vld [vmem:[#allocation5 + $0x82c] ss:$16 sps:$4 sm:$0xff]   ;;  %v4498_v26 = vcombine.high %v6375_v21, %v6379_v23 }
 0x14a   :  { %3442 = vmatprep.subr.bf16.mxu0 %v5521_v27  ;;  %3786 = vmatprep.subr.bf16.mxu1 %v5524_v28  ;;  %v5603_v27 = vld [vmem:[#allocation5 + $0x820] ss:$16 sps:$4 sm:$0xff]   ;;  %v5606_v28 = vld [vmem:[#allocation5 + $0x828] ss:$16 sps:$4 sm:$0xff]  }
 0x14d   :  { %3443 = vmatpush1.bf16.msra.mxu0 %v5519_v29  ;;  %3787 = vmatpush1.bf16.msra.mxu1 %v5522_v30  ;;  %v5609_v29 = vld [vmem:[#allocation5 + $0x840] ss:$16 sps:$4 sm:$0xff]   ;;  %v5612_v30 = vld [vmem:[#allocation5 + $0x848] ss:$16 sps:$4 sm:$0xff]  }
 0x14e   :  { %3444 = vmatprep.subr.bf16.mxu0 %v5527_v31  ;;  %3788 = vmatprep.subr.bf16.mxu1 %v5530_v32  ;;  %v5617_v31 = vld [vmem:[#allocation5 + $0x864] ss:$16 sps:$4 sm:$0xff]   ;;  %v5620_v32 = vld [vmem:[#allocation5 + $0x86c] ss:$16 sps:$4 sm:$0xff]  }
 0x151   :  { %3445 = vmatpush1.bf16.msra.mxu0 %v5525_v33  ;;  %3789 = vmatpush1.bf16.msra.mxu1 %v5528_v34  ;;  %v5615_v33 = vld [vmem:[#allocation5 + $0x860] ss:$16 sps:$4 sm:$0xff]   ;;  %v5618_v34 = vld [vmem:[#allocation5 + $0x868] ss:$16 sps:$4 sm:$0xff]  }
 0x152   :  { %3446 = vmatprep.subr.bf16.mxu0 %v5533_v35  ;;  %3790 = vmatprep.subr.bf16.mxu1 %v5536_v36  ;;  %v5623_v35 = vld [vmem:[#allocation5 + $0x884] ss:$16 sps:$4 sm:$0xff]   ;;  %v5626_v36 = vld [vmem:[#allocation5 + $0x88c] ss:$16 sps:$4 sm:$0xff]  }
 0x155   :  { %3447 = vmatpush1.bf16.msra.mxu0 %v5531_v37  ;;  %3791 = vmatpush1.bf16.msra.mxu1 %v5534_v38  ;;  %v5621_v37 = vld [vmem:[#allocation5 + $0x880] ss:$16 sps:$4 sm:$0xff]   ;;  %v5624_v38 = vld [vmem:[#allocation5 + $0x888] ss:$16 sps:$4 sm:$0xff]  }
 0x156   :  { %3448 = vmatprep.subr.bf16.mxu0 %v5539_v39  ;;  %3792 = vmatprep.subr.bf16.mxu1 %v5542_v40  ;;  %v5629_v39 = vld [vmem:[#allocation5 + $0x8a4] ss:$16 sps:$4 sm:$0xff]   ;;  %v5632_v40 = vld [vmem:[#allocation5 + $0x8ac] ss:$16 sps:$4 sm:$0xff]  }
 0x159   :  { %3449 = vmatpush1.bf16.msra.mxu0 %v5537_v41  ;;  %3793 = vmatpush1.bf16.msra.mxu1 %v5540_v42  ;;  %v5627_v41 = vld [vmem:[#allocation5 + $0x8a0] ss:$16 sps:$4 sm:$0xff]   ;;  %v5630_v42 = vld [vmem:[#allocation5 + $0x8a8] ss:$16 sps:$4 sm:$0xff]  }
 0x15a   :  { %3450 = vmatprep.subr.bf16.mxu0 %v5545_v43  ;;  %3794 = vmatprep.subr.bf16.mxu1 %v5548_v44  ;;  %v5635_v43 = vld [vmem:[#allocation5 + $0x8c4] ss:$16 sps:$4 sm:$0xff]   ;;  %v5638_v44 = vld [vmem:[#allocation5 + $0x8cc] ss:$16 sps:$4 sm:$0xff]  }
 0x15d   :  { %3451 = vmatpush1.bf16.msra.mxu0 %v5543_v45  ;;  %3795 = vmatpush1.bf16.msra.mxu1 %v5546_v46  ;;  %v5633_v45 = vld [vmem:[#allocation5 + $0x8c0] ss:$16 sps:$4 sm:$0xff]   ;;  %v5636_v46 = vld [vmem:[#allocation5 + $0x8c8] ss:$16 sps:$4 sm:$0xff]  }
 0x15e   :  { %3452 = vmatprep.subr.bf16.mxu0 %v5551_v47  ;;  %3796 = vmatprep.subr.bf16.mxu1 %v5554_v48  ;;  %v5641_v47 = vld [vmem:[#allocation5 + $0x8e4] ss:$16 sps:$4 sm:$0xff]   ;;  %v5644_v48 = vld [vmem:[#allocation5 + $0x8ec] ss:$16 sps:$4 sm:$0xff]  }
 0x161   :  { %3453 = vmatpush1.bf16.msra.mxu0 %v5549_v49  ;;  %3797 = vmatpush1.bf16.msra.mxu1 %v5552_v50  ;;  %v5639_v49 = vld [vmem:[#allocation5 + $0x8e0] ss:$16 sps:$4 sm:$0xff]   ;;  %v5642_v50 = vld [vmem:[#allocation5 + $0x8e8] ss:$16 sps:$4 sm:$0xff]  }
 0x162   :  { %3454 = vmatprep.subr.bf16.mxu0 %v5557_v51  ;;  %3798 = vmatprep.subr.bf16.mxu1 %v5560_v52  ;;  %v5647_v51 = vld [vmem:[#allocation5 + $0x904] ss:$16 sps:$4 sm:$0xff]   ;;  %v5650_v52 = vld [vmem:[#allocation5 + $0x90c] ss:$16 sps:$4 sm:$0xff]  }
 0x165   :  { %3455 = vmatpush1.bf16.msra.mxu0 %v5555_v53  ;;  %3799 = vmatpush1.bf16.msra.mxu1 %v5558_v54  ;;  %v5645_v53 = vld [vmem:[#allocation5 + $0x900] ss:$16 sps:$4 sm:$0xff]   ;;  %v5648_v54 = vld [vmem:[#allocation5 + $0x908] ss:$16 sps:$4 sm:$0xff]  }
 0x166   :  { %3456 = vmatprep.subr.bf16.mxu0 %v5563_v55  ;;  %3800 = vmatprep.subr.bf16.mxu1 %v5566_v56  ;;  %v5653_v55 = vld [vmem:[#allocation5 + $0x924] ss:$16 sps:$4 sm:$0xff]   ;;  %v5656_v56 = vld [vmem:[#allocation5 + $0x92c] ss:$16 sps:$4 sm:$0xff]  }
 0x169   :  { %3457 = vmatpush1.bf16.msra.mxu0 %v5561_v57  ;;  %3801 = vmatpush1.bf16.msra.mxu1 %v5564_v58  ;;  %v5651_v57 = vld [vmem:[#allocation5 + $0x920] ss:$16 sps:$4 sm:$0xff]   ;;  %v5654_v58 = vld [vmem:[#allocation5 + $0x928] ss:$16 sps:$4 sm:$0xff]  }
 0x16a   :  { %3458 = vmatprep.subr.bf16.mxu0 %v5569_v59  ;;  %3802 = vmatprep.subr.bf16.mxu1 %v5572_v60  ;;  %v5659_v59 = vld [vmem:[#allocation5 + $0x944] ss:$16 sps:$4 sm:$0xff]   ;;  %v5662_v60 = vld [vmem:[#allocation5 + $0x94c] ss:$16 sps:$4 sm:$0xff]  }
 0x16d   :  { %3459 = vmatpush1.bf16.msra.mxu0 %v5567_v61  ;;  %3803 = vmatpush1.bf16.msra.mxu1 %v5570_v62  ;;  %v5657_v61 = vld [vmem:[#allocation5 + $0x940] ss:$16 sps:$4 sm:$0xff]   ;;  %v5660_v62 = vld [vmem:[#allocation5 + $0x948] ss:$16 sps:$4 sm:$0xff]  }
 0x16e   :  { %3460 = vmatprep.subr.bf16.mxu0 %v5575_v63  ;;  %3804 = vmatprep.subr.bf16.mxu1 %v5578_v0  ;;  %v5665_v63 = vld [vmem:[#allocation5 + $0x964] ss:$16 sps:$4 sm:$0xff]   ;;  %v5668_v0 = vld [vmem:[#allocation5 + $0x96c] ss:$16 sps:$4 sm:$0xff]  }
 0x171   :  { %3461 = vmatpush1.bf16.msra.mxu0 %v5573_v1  ;;  %3805 = vmatpush1.bf16.msra.mxu1 %v5576_v2  ;;  %v5663_v1 = vld [vmem:[#allocation5 + $0x960] ss:$16 sps:$4 sm:$0xff]   ;;  %v5666_v2 = vld [vmem:[#allocation5 + $0x968] ss:$16 sps:$4 sm:$0xff]  }
 0x172   :  { %3462 = vmatprep.subr.bf16.mxu0 %v5581_v3  ;;  %3806 = vmatprep.subr.bf16.mxu1 %v5584_v4  ;;  %v5671_v3 = vld [vmem:[#allocation5 + $0x984] ss:$16 sps:$4 sm:$0xff]   ;;  %v5674_v4 = vld [vmem:[#allocation5 + $0x98c] ss:$16 sps:$4 sm:$0xff]  }
 0x175   :  { %3463 = vmatpush1.bf16.msra.mxu0 %v5579_v5  ;;  %3807 = vmatpush1.bf16.msra.mxu1 %v5582_v6  ;;  %v5669_v5 = vld [vmem:[#allocation5 + $0x980] ss:$16 sps:$4 sm:$0xff]   ;;  %v5672_v6 = vld [vmem:[#allocation5 + $0x988] ss:$16 sps:$4 sm:$0xff]  }
 0x176   :  { %3464 = vmatprep.subr.bf16.mxu0 %v5587_v7  ;;  %3808 = vmatprep.subr.bf16.mxu1 %v5590_v8  ;;  %v5677_v7 = vld [vmem:[#allocation5 + $0x9a4] ss:$16 sps:$4 sm:$0xff]   ;;  %v5680_v8 = vld [vmem:[#allocation5 + $0x9ac] ss:$16 sps:$4 sm:$0xff]  }
 0x179   :  { %3465 = vmatpush1.bf16.msra.mxu0 %v5585_v9  ;;  %3809 = vmatpush1.bf16.msra.mxu1 %v5588_v10  ;;  %v5675_v9 = vld [vmem:[#allocation5 + $0x9a0] ss:$16 sps:$4 sm:$0xff]   ;;  %v5678_v10 = vld [vmem:[#allocation5 + $0x9a8] ss:$16 sps:$4 sm:$0xff]  }
 0x17a   :  { %3466 = vmatprep.subr.bf16.mxu0 %v5593_v11  ;;  %3810 = vmatprep.subr.bf16.mxu1 %v5596_v12  ;;  %v5683_v11 = vld [vmem:[#allocation5 + $0x9c4] ss:$16 sps:$4 sm:$0xff]   ;;  %v5686_v12 = vld [vmem:[#allocation5 + $0x9cc] ss:$16 sps:$4 sm:$0xff]  }
 0x17d   :  { %3467 = vmatpush1.bf16.msra.mxu0 %v5591_v13  ;;  %3811 = vmatpush1.bf16.msra.mxu1 %v5594_v16  ;;  %v5681_v13 = vld [vmem:[#allocation5 + $0x9c0] ss:$16 sps:$4 sm:$0xff]   ;;  %v5684_v16 = vld [vmem:[#allocation5 + $0x9c8] ss:$16 sps:$4 sm:$0xff]  }
 0x17e   :  { %3479 = vmatprep.subr.bf16.mxu0 %v5599_v17  ;;  %3823 = vmatprep.subr.bf16.mxu1 %v5602_v20  ;;  %v5689_v17 = vld [vmem:[#allocation5 + $0x9e4] ss:$16 sps:$4 sm:$0xff]   ;;  %v5692_v20 = vld [vmem:[#allocation5 + $0x9ec] ss:$16 sps:$4 sm:$0xff]  }
 0x180   :  { %3469 = vmatmul.mubr.bf16.vlgmr.msra.gmra.mrb[0].mxu0 %v4495_v22  ;;  %3813 = vmatmul.mubr.bf16.vlgmr.msra.gmra.mrb[0].mxu1 %v4495_v22  ;;  %v5687_v22 = vld [vmem:[#allocation5 + $0x9e0] ss:$16 sps:$4 sm:$0xff]  }
 0x181   :  { %3480 = vmatpush1.bf16.msra.mxu0 %v5597_v24  ;;  %3824 = vmatpush1.bf16.msra.mxu1 %v5600_v14  ;;  %v5690_v24 = vld [vmem:[#allocation5 + $0x9e8] ss:$16 sps:$4 sm:$0xff]   ;;  %v5695_v14 = vld [vmem:[#allocation5 + $0xa04] ss:$16 sps:$4 sm:$0xff]  }
 0x182   :  { %3481 = vmatprep.subr.bf16.mxu0 %v5605_v15  ;;  %3825 = vmatprep.subr.bf16.mxu1 %v5608_v25  ;;  %v5698_v15 = vld [vmem:[#allocation5 + $0xa0c] ss:$16 sps:$4 sm:$0xff]  }
 0x183   :  { %3511 = vmatprep.mubr.bf16.mxu0 %v4498_v26  ;;  %3855 = vmatprep.mubr.bf16.mxu1 %v4498_v26  ;;  %v6383_v25 = vld [vmem:[#allocation2 + $0x28] sm:$0xff] }
 0x184   :  { %v6385_v26 = vld [vmem:[#allocation2 + $0x68] sm:$0xff] }
 0x185   :  { %3482 = vmatpush1.bf16.msra.mxu0 %v5603_v27  ;;  %3826 = vmatpush1.bf16.msra.mxu1 %v5606_v28  ;;  %v4497_v27 = vcombine.low %v6375_v21, %v6379_v23  ;;  %v5693_v28 = vld [vmem:[#allocation5 + $0xa00] ss:$16 sps:$4 sm:$0xff]   ;;  %v5707_v21 = vld [vmem:[#allocation5 + $0xa44] ss:$16 sps:$4 sm:$0xff]   ;;  %v5710_v23 = vld [vmem:[#allocation5 + $0xa4c] ss:$16 sps:$4 sm:$0xff]  }
 0x186   :  { %3483 = vmatprep.subr.bf16.mxu0 %v5611_v18  ;;  %3827 = vmatprep.subr.bf16.mxu1 %v5614_v19  ;;  %v5696_v18 = vld [vmem:[#allocation5 + $0xa08] ss:$16 sps:$4 sm:$0xff]   ;;  %v5701_v19 = vld [vmem:[#allocation5 + $0xa24] ss:$16 sps:$4 sm:$0xff]  }
 0x189   :  { %3484 = vmatpush1.bf16.msra.mxu0 %v5609_v29  ;;  %3828 = vmatpush1.bf16.msra.mxu1 %v5612_v30  ;;  %v5704_v29 = vld [vmem:[#allocation5 + $0xa2c] ss:$16 sps:$4 sm:$0xff]   ;;  %v4500_v30 = vcombine.high %v6383_v25, %v6385_v26 }
 0x18a   :  { %3485 = vmatprep.subr.bf16.mxu0 %v5617_v31  ;;  %3829 = vmatprep.subr.bf16.mxu1 %v5620_v32  ;;  %v5699_v31 = vld [vmem:[#allocation5 + $0xa20] ss:$16 sps:$4 sm:$0xff]   ;;  %v5702_v32 = vld [vmem:[#allocation5 + $0xa28] ss:$16 sps:$4 sm:$0xff]  }
 0x18d   :  { %3486 = vmatpush1.bf16.msra.mxu0 %v5615_v33  ;;  %3830 = vmatpush1.bf16.msra.mxu1 %v5618_v34  ;;  %v5705_v33 = vld [vmem:[#allocation5 + $0xa40] ss:$16 sps:$4 sm:$0xff]   ;;  %v5708_v34 = vld [vmem:[#allocation5 + $0xa48] ss:$16 sps:$4 sm:$0xff]  }
 0x18e   :  { %3487 = vmatprep.subr.bf16.mxu0 %v5623_v35  ;;  %3831 = vmatprep.subr.bf16.mxu1 %v5626_v36  ;;  %v5713_v35 = vld [vmem:[#allocation5 + $0xa64] ss:$16 sps:$4 sm:$0xff]   ;;  %v5716_v36 = vld [vmem:[#allocation5 + $0xa6c] ss:$16 sps:$4 sm:$0xff]  }
 0x191   :  { %3488 = vmatpush1.bf16.msra.mxu0 %v5621_v37  ;;  %3832 = vmatpush1.bf16.msra.mxu1 %v5624_v38  ;;  %v5711_v37 = vld [vmem:[#allocation5 + $0xa60] ss:$16 sps:$4 sm:$0xff]   ;;  %v5714_v38 = vld [vmem:[#allocation5 + $0xa68] ss:$16 sps:$4 sm:$0xff]  }
 0x192   :  { %3489 = vmatprep.subr.bf16.mxu0 %v5629_v39  ;;  %3833 = vmatprep.subr.bf16.mxu1 %v5632_v40  ;;  %v5719_v39 = vld [vmem:[#allocation5 + $0xa84] ss:$16 sps:$4 sm:$0xff]   ;;  %v5722_v40 = vld [vmem:[#allocation5 + $0xa8c] ss:$16 sps:$4 sm:$0xff]  }
 0x195   :  { %3490 = vmatpush1.bf16.msra.mxu0 %v5627_v41  ;;  %3834 = vmatpush1.bf16.msra.mxu1 %v5630_v42  ;;  %v5717_v41 = vld [vmem:[#allocation5 + $0xa80] ss:$16 sps:$4 sm:$0xff]   ;;  %v5720_v42 = vld [vmem:[#allocation5 + $0xa88] ss:$16 sps:$4 sm:$0xff]  }
 0x196   :  { %3491 = vmatprep.subr.bf16.mxu0 %v5635_v43  ;;  %3835 = vmatprep.subr.bf16.mxu1 %v5638_v44  ;;  %v5725_v43 = vld [vmem:[#allocation5 + $0xaa4] ss:$16 sps:$4 sm:$0xff]   ;;  %v5728_v44 = vld [vmem:[#allocation5 + $0xaac] ss:$16 sps:$4 sm:$0xff]  }
 0x199   :  { %3492 = vmatpush1.bf16.msra.mxu0 %v5633_v45  ;;  %3836 = vmatpush1.bf16.msra.mxu1 %v5636_v46  ;;  %v5723_v45 = vld [vmem:[#allocation5 + $0xaa0] ss:$16 sps:$4 sm:$0xff]   ;;  %v5726_v46 = vld [vmem:[#allocation5 + $0xaa8] ss:$16 sps:$4 sm:$0xff]  }
 0x19a   :  { %3493 = vmatprep.subr.bf16.mxu0 %v5641_v47  ;;  %3837 = vmatprep.subr.bf16.mxu1 %v5644_v48  ;;  %v5731_v47 = vld [vmem:[#allocation5 + $0xac4] ss:$16 sps:$4 sm:$0xff]   ;;  %v5734_v48 = vld [vmem:[#allocation5 + $0xacc] ss:$16 sps:$4 sm:$0xff]  }
 0x19d   :  { %3494 = vmatpush1.bf16.msra.mxu0 %v5639_v49  ;;  %3838 = vmatpush1.bf16.msra.mxu1 %v5642_v50  ;;  %v5729_v49 = vld [vmem:[#allocation5 + $0xac0] ss:$16 sps:$4 sm:$0xff]   ;;  %v5732_v50 = vld [vmem:[#allocation5 + $0xac8] ss:$16 sps:$4 sm:$0xff]  }
 0x19e   :  { %3495 = vmatprep.subr.bf16.mxu0 %v5647_v51  ;;  %3839 = vmatprep.subr.bf16.mxu1 %v5650_v52  ;;  %v5737_v51 = vld [vmem:[#allocation5 + $0xae4] ss:$16 sps:$4 sm:$0xff]   ;;  %v5740_v52 = vld [vmem:[#allocation5 + $0xaec] ss:$16 sps:$4 sm:$0xff]  }
 0x1a1   :  { %3496 = vmatpush1.bf16.msra.mxu0 %v5645_v53  ;;  %3840 = vmatpush1.bf16.msra.mxu1 %v5648_v54  ;;  %v5735_v53 = vld [vmem:[#allocation5 + $0xae0] ss:$16 sps:$4 sm:$0xff]   ;;  %v5738_v54 = vld [vmem:[#allocation5 + $0xae8] ss:$16 sps:$4 sm:$0xff]  }
 0x1a2   :  { %3497 = vmatprep.subr.bf16.mxu0 %v5653_v55  ;;  %3841 = vmatprep.subr.bf16.mxu1 %v5656_v56  ;;  %v5743_v55 = vld [vmem:[#allocation5 + $0xb04] ss:$16 sps:$4 sm:$0xff]   ;;  %v5746_v56 = vld [vmem:[#allocation5 + $0xb0c] ss:$16 sps:$4 sm:$0xff]  }
 0x1a5   :  { %3498 = vmatpush1.bf16.msra.mxu0 %v5651_v57  ;;  %3842 = vmatpush1.bf16.msra.mxu1 %v5654_v58  ;;  %v5741_v57 = vld [vmem:[#allocation5 + $0xb00] ss:$16 sps:$4 sm:$0xff]   ;;  %v5744_v58 = vld [vmem:[#allocation5 + $0xb08] ss:$16 sps:$4 sm:$0xff]  }
 0x1a6   :  { %3499 = vmatprep.subr.bf16.mxu0 %v5659_v59  ;;  %3843 = vmatprep.subr.bf16.mxu1 %v5662_v60  ;;  %v5749_v59 = vld [vmem:[#allocation5 + $0xb24] ss:$16 sps:$4 sm:$0xff]   ;;  %v5752_v60 = vld [vmem:[#allocation5 + $0xb2c] ss:$16 sps:$4 sm:$0xff]  }
 0x1a9   :  { %3500 = vmatpush1.bf16.msra.mxu0 %v5657_v61  ;;  %3844 = vmatpush1.bf16.msra.mxu1 %v5660_v62  ;;  %v5747_v61 = vld [vmem:[#allocation5 + $0xb20] ss:$16 sps:$4 sm:$0xff]   ;;  %v5750_v62 = vld [vmem:[#allocation5 + $0xb28] ss:$16 sps:$4 sm:$0xff]  }
 0x1aa   :  { %3501 = vmatprep.subr.bf16.mxu0 %v5665_v63  ;;  %3845 = vmatprep.subr.bf16.mxu1 %v5668_v0  ;;  %v5755_v63 = vld [vmem:[#allocation5 + $0xb44] ss:$16 sps:$4 sm:$0xff]   ;;  %v5758_v0 = vld [vmem:[#allocation5 + $0xb4c] ss:$16 sps:$4 sm:$0xff]  }
 0x1ad   :  { %3502 = vmatpush1.bf16.msra.mxu0 %v5663_v1  ;;  %3846 = vmatpush1.bf16.msra.mxu1 %v5666_v2  ;;  %v5753_v1 = vld [vmem:[#allocation5 + $0xb40] ss:$16 sps:$4 sm:$0xff]   ;;  %v5756_v2 = vld [vmem:[#allocation5 + $0xb48] ss:$16 sps:$4 sm:$0xff]  }
 0x1ae   :  { %3503 = vmatprep.subr.bf16.mxu0 %v5671_v3  ;;  %3847 = vmatprep.subr.bf16.mxu1 %v5674_v4  ;;  %v5761_v3 = vld [vmem:[#allocation5 + $0xb64] ss:$16 sps:$4 sm:$0xff]   ;;  %v5764_v4 = vld [vmem:[#allocation5 + $0xb6c] ss:$16 sps:$4 sm:$0xff]  }
 0x1b1   :  { %3504 = vmatpush1.bf16.msra.mxu0 %v5669_v5  ;;  %3848 = vmatpush1.bf16.msra.mxu1 %v5672_v6  ;;  %v5759_v5 = vld [vmem:[#allocation5 + $0xb60] ss:$16 sps:$4 sm:$0xff]   ;;  %v5762_v6 = vld [vmem:[#allocation5 + $0xb68] ss:$16 sps:$4 sm:$0xff]  }
 0x1b2   :  { %3505 = vmatprep.subr.bf16.mxu0 %v5677_v7  ;;  %3849 = vmatprep.subr.bf16.mxu1 %v5680_v8  ;;  %v5767_v7 = vld [vmem:[#allocation5 + $0xb84] ss:$16 sps:$4 sm:$0xff]   ;;  %v5770_v8 = vld [vmem:[#allocation5 + $0xb8c] ss:$16 sps:$4 sm:$0xff]  }
 0x1b5   :  { %3506 = vmatpush1.bf16.msra.mxu0 %v5675_v9  ;;  %3850 = vmatpush1.bf16.msra.mxu1 %v5678_v10  ;;  %v5765_v9 = vld [vmem:[#allocation5 + $0xb80] ss:$16 sps:$4 sm:$0xff]   ;;  %v5768_v10 = vld [vmem:[#allocation5 + $0xb88] ss:$16 sps:$4 sm:$0xff]  }
 0x1b6   :  { %3507 = vmatprep.subr.bf16.mxu0 %v5683_v11  ;;  %3851 = vmatprep.subr.bf16.mxu1 %v5686_v12  ;;  %v5773_v11 = vld [vmem:[#allocation5 + $0xba4] ss:$16 sps:$4 sm:$0xff]   ;;  %v5776_v12 = vld [vmem:[#allocation5 + $0xbac] ss:$16 sps:$4 sm:$0xff]  }
 0x1b9   :  { %3508 = vmatpush1.bf16.msra.mxu0 %v5681_v13  ;;  %3852 = vmatpush1.bf16.msra.mxu1 %v5684_v16  ;;  %v5771_v13 = vld [vmem:[#allocation5 + $0xba0] ss:$16 sps:$4 sm:$0xff]   ;;  %v5774_v16 = vld [vmem:[#allocation5 + $0xba8] ss:$16 sps:$4 sm:$0xff]  }
 0x1ba   :  { %3509 = vmatprep.subr.bf16.mxu0 %v5689_v17  ;;  %3853 = vmatprep.subr.bf16.mxu1 %v5692_v20  ;;  %v5779_v17 = vld [vmem:[#allocation5 + $0xbc4] ss:$16 sps:$4 sm:$0xff]   ;;  %v5782_v20 = vld [vmem:[#allocation5 + $0xbcc] ss:$16 sps:$4 sm:$0xff]  }
 0x1bd   :  { %3510 = vmatpush1.bf16.msra.mxu0 %v5687_v22  ;;  %3854 = vmatpush1.bf16.msra.mxu1 %v5690_v24  ;;  %v5777_v22 = vld [vmem:[#allocation5 + $0xbc0] ss:$16 sps:$4 sm:$0xff]   ;;  %v5780_v24 = vld [vmem:[#allocation5 + $0xbc8] ss:$16 sps:$4 sm:$0xff]  }
 0x1be   :  { %3522 = vmatprep.subr.bf16.mxu0 %v5695_v14  ;;  %3866 = vmatprep.subr.bf16.mxu1 %v5698_v15  ;;  %v5785_v14 = vld [vmem:[#allocation5 + $0xbe4] ss:$16 sps:$4 sm:$0xff]   ;;  %v5788_v15 = vld [vmem:[#allocation5 + $0xbec] ss:$16 sps:$4 sm:$0xff]  }
 0x1c0   :  { %3512 = vmatmul.mubr.bf16.vlgmr.msra.gmra.mrb[0].mxu0 %v4497_v27  ;;  %3856 = vmatmul.mubr.bf16.vlgmr.msra.gmra.mrb[0].mxu1 %v4497_v27  ;;  %v5783_v27 = vld [vmem:[#allocation5 + $0xbe0] ss:$16 sps:$4 sm:$0xff]  }
 0x1c1   :  { %3523 = vmatpush1.bf16.msra.mxu0 %v5693_v28  ;;  %3867 = vmatpush1.bf16.msra.mxu1 %v5696_v18  ;;  %v5786_v28 = vld [vmem:[#allocation5 + $0xbe8] ss:$16 sps:$4 sm:$0xff]   ;;  %v5791_v18 = vld [vmem:[#allocation5 + $0xc04] ss:$16 sps:$4 sm:$0xff]  }
 0x1c2   :  { %3524 = vmatprep.subr.bf16.mxu0 %v5701_v19  ;;  %3868 = vmatprep.subr.bf16.mxu1 %v5704_v29  ;;  %v5794_v19 = vld [vmem:[#allocation5 + $0xc0c] ss:$16 sps:$4 sm:$0xff]   ;;  %v4499_v29 = vcombine.low %v6383_v25, %v6385_v26  ;;  %v5795_v25 = vld [vmem:[#allocation5 + $0xc20] ss:$16 sps:$4 sm:$0xff]   ;;  %v5798_v26 = vld [vmem:[#allocation5 + $0xc28] ss:$16 sps:$4 sm:$0xff]  }
 0x1c3   :  { %3554 = vmatprep.mubr.bf16.mxu0 %v4500_v30  ;;  %3898 = vmatprep.mubr.bf16.mxu1 %v4500_v30  ;;  %v6393_v30 = vld [vmem:[#allocation2 + $0x30] sm:$0xff] }
 0x1c5   :  { %3525 = vmatpush1.bf16.msra.mxu0 %v5699_v31  ;;  %3869 = vmatpush1.bf16.msra.mxu1 %v5702_v32  ;;  %v6395_v31 = vld [vmem:[#allocation2 + $0x70] sm:$0xff] }
 0x1c6   :  { %3526 = vmatprep.subr.bf16.mxu0 %v5707_v21  ;;  %3870 = vmatprep.subr.bf16.mxu1 %v5710_v23  ;;  %v5789_v32 = vld [vmem:[#allocation5 + $0xc00] ss:$16 sps:$4 sm:$0xff]   ;;  %v5792_v21 = vld [vmem:[#allocation5 + $0xc08] ss:$16 sps:$4 sm:$0xff]   ;;  %v5797_v23 = vld [vmem:[#allocation5 + $0xc24] ss:$16 sps:$4 sm:$0xff]  }
 0x1c9   :  { %3527 = vmatpush1.bf16.msra.mxu0 %v5705_v33  ;;  %3871 = vmatpush1.bf16.msra.mxu1 %v5708_v34  ;;  %v5800_v33 = vld [vmem:[#allocation5 + $0xc2c] ss:$16 sps:$4 sm:$0xff]   ;;  %v4502_v34 = vcombine.high %v6393_v30, %v6395_v31 }
 0x1ca   :  { %3528 = vmatprep.subr.bf16.mxu0 %v5713_v35  ;;  %3872 = vmatprep.subr.bf16.mxu1 %v5716_v36  ;;  %v5803_v35 = vld [vmem:[#allocation5 + $0xc44] ss:$16 sps:$4 sm:$0xff]   ;;  %v5806_v36 = vld [vmem:[#allocation5 + $0xc4c] ss:$16 sps:$4 sm:$0xff]  }
 0x1cd   :  { %3529 = vmatpush1.bf16.msra.mxu0 %v5711_v37  ;;  %3873 = vmatpush1.bf16.msra.mxu1 %v5714_v38  ;;  %v5801_v37 = vld [vmem:[#allocation5 + $0xc40] ss:$16 sps:$4 sm:$0xff]   ;;  %v5804_v38 = vld [vmem:[#allocation5 + $0xc48] ss:$16 sps:$4 sm:$0xff]  }
 0x1ce   :  { %3530 = vmatprep.subr.bf16.mxu0 %v5719_v39  ;;  %3874 = vmatprep.subr.bf16.mxu1 %v5722_v40  ;;  %v5809_v39 = vld [vmem:[#allocation5 + $0xc64] ss:$16 sps:$4 sm:$0xff]   ;;  %v5812_v40 = vld [vmem:[#allocation5 + $0xc6c] ss:$16 sps:$4 sm:$0xff]  }
 0x1d1   :  { %3531 = vmatpush1.bf16.msra.mxu0 %v5717_v41  ;;  %3875 = vmatpush1.bf16.msra.mxu1 %v5720_v42  ;;  %v5807_v41 = vld [vmem:[#allocation5 + $0xc60] ss:$16 sps:$4 sm:$0xff]   ;;  %v5810_v42 = vld [vmem:[#allocation5 + $0xc68] ss:$16 sps:$4 sm:$0xff]  }
 0x1d2   :  { %3532 = vmatprep.subr.bf16.mxu0 %v5725_v43  ;;  %3876 = vmatprep.subr.bf16.mxu1 %v5728_v44  ;;  %v5815_v43 = vld [vmem:[#allocation5 + $0xc84] ss:$16 sps:$4 sm:$0xff]   ;;  %v5818_v44 = vld [vmem:[#allocation5 + $0xc8c] ss:$16 sps:$4 sm:$0xff]  }
 0x1d5   :  { %3533 = vmatpush1.bf16.msra.mxu0 %v5723_v45  ;;  %3877 = vmatpush1.bf16.msra.mxu1 %v5726_v46  ;;  %v5813_v45 = vld [vmem:[#allocation5 + $0xc80] ss:$16 sps:$4 sm:$0xff]   ;;  %v5816_v46 = vld [vmem:[#allocation5 + $0xc88] ss:$16 sps:$4 sm:$0xff]  }
 0x1d6   :  { %3534 = vmatprep.subr.bf16.mxu0 %v5731_v47  ;;  %3878 = vmatprep.subr.bf16.mxu1 %v5734_v48  ;;  %v5821_v47 = vld [vmem:[#allocation5 + $0xca4] ss:$16 sps:$4 sm:$0xff]   ;;  %v5824_v48 = vld [vmem:[#allocation5 + $0xcac] ss:$16 sps:$4 sm:$0xff]  }
 0x1d9   :  { %3535 = vmatpush1.bf16.msra.mxu0 %v5729_v49  ;;  %3879 = vmatpush1.bf16.msra.mxu1 %v5732_v50  ;;  %v5819_v49 = vld [vmem:[#allocation5 + $0xca0] ss:$16 sps:$4 sm:$0xff]   ;;  %v5822_v50 = vld [vmem:[#allocation5 + $0xca8] ss:$16 sps:$4 sm:$0xff]  }
 0x1da   :  { %3536 = vmatprep.subr.bf16.mxu0 %v5737_v51  ;;  %3880 = vmatprep.subr.bf16.mxu1 %v5740_v52  ;;  %v5827_v51 = vld [vmem:[#allocation5 + $0xcc4] ss:$16 sps:$4 sm:$0xff]   ;;  %v5830_v52 = vld [vmem:[#allocation5 + $0xccc] ss:$16 sps:$4 sm:$0xff]  }
 0x1dd   :  { %3537 = vmatpush1.bf16.msra.mxu0 %v5735_v53  ;;  %3881 = vmatpush1.bf16.msra.mxu1 %v5738_v54  ;;  %v5825_v53 = vld [vmem:[#allocation5 + $0xcc0] ss:$16 sps:$4 sm:$0xff]   ;;  %v5828_v54 = vld [vmem:[#allocation5 + $0xcc8] ss:$16 sps:$4 sm:$0xff]  }
 0x1de   :  { %3538 = vmatprep.subr.bf16.mxu0 %v5743_v55  ;;  %3882 = vmatprep.subr.bf16.mxu1 %v5746_v56  ;;  %v5833_v55 = vld [vmem:[#allocation5 + $0xce4] ss:$16 sps:$4 sm:$0xff]   ;;  %v5836_v56 = vld [vmem:[#allocation5 + $0xcec] ss:$16 sps:$4 sm:$0xff]  }
 0x1e1   :  { %3539 = vmatpush1.bf16.msra.mxu0 %v5741_v57  ;;  %3883 = vmatpush1.bf16.msra.mxu1 %v5744_v58  ;;  %v5831_v57 = vld [vmem:[#allocation5 + $0xce0] ss:$16 sps:$4 sm:$0xff]   ;;  %v5834_v58 = vld [vmem:[#allocation5 + $0xce8] ss:$16 sps:$4 sm:$0xff]  }
 0x1e2   :  { %3540 = vmatprep.subr.bf16.mxu0 %v5749_v59  ;;  %3884 = vmatprep.subr.bf16.mxu1 %v5752_v60  ;;  %v5839_v59 = vld [vmem:[#allocation5 + $0xd04] ss:$16 sps:$4 sm:$0xff]   ;;  %v5842_v60 = vld [vmem:[#allocation5 + $0xd0c] ss:$16 sps:$4 sm:$0xff]  }
 0x1e5   :  { %3541 = vmatpush1.bf16.msra.mxu0 %v5747_v61  ;;  %3885 = vmatpush1.bf16.msra.mxu1 %v5750_v62  ;;  %v5837_v61 = vld [vmem:[#allocation5 + $0xd00] ss:$16 sps:$4 sm:$0xff]   ;;  %v5840_v62 = vld [vmem:[#allocation5 + $0xd08] ss:$16 sps:$4 sm:$0xff]  }
 0x1e6   :  { %3542 = vmatprep.subr.bf16.mxu0 %v5755_v63  ;;  %3886 = vmatprep.subr.bf16.mxu1 %v5758_v0  ;;  %v5845_v63 = vld [vmem:[#allocation5 + $0xd24] ss:$16 sps:$4 sm:$0xff]   ;;  %v5848_v0 = vld [vmem:[#allocation5 + $0xd2c] ss:$16 sps:$4 sm:$0xff]  }
 0x1e9   :  { %3543 = vmatpush1.bf16.msra.mxu0 %v5753_v1  ;;  %3887 = vmatpush1.bf16.msra.mxu1 %v5756_v2  ;;  %v5843_v1 = vld [vmem:[#allocation5 + $0xd20] ss:$16 sps:$4 sm:$0xff]   ;;  %v5846_v2 = vld [vmem:[#allocation5 + $0xd28] ss:$16 sps:$4 sm:$0xff]  }
 0x1ea   :  { %3544 = vmatprep.subr.bf16.mxu0 %v5761_v3  ;;  %3888 = vmatprep.subr.bf16.mxu1 %v5764_v4  ;;  %v5851_v3 = vld [vmem:[#allocation5 + $0xd44] ss:$16 sps:$4 sm:$0xff]   ;;  %v5854_v4 = vld [vmem:[#allocation5 + $0xd4c] ss:$16 sps:$4 sm:$0xff]  }
 0x1ed   :  { %3545 = vmatpush1.bf16.msra.mxu0 %v5759_v5  ;;  %3889 = vmatpush1.bf16.msra.mxu1 %v5762_v6  ;;  %v5849_v5 = vld [vmem:[#allocation5 + $0xd40] ss:$16 sps:$4 sm:$0xff]   ;;  %v5852_v6 = vld [vmem:[#allocation5 + $0xd48] ss:$16 sps:$4 sm:$0xff]  }
 0x1ee   :  { %3546 = vmatprep.subr.bf16.mxu0 %v5767_v7  ;;  %3890 = vmatprep.subr.bf16.mxu1 %v5770_v8  ;;  %v5857_v7 = vld [vmem:[#allocation5 + $0xd64] ss:$16 sps:$4 sm:$0xff]   ;;  %v5860_v8 = vld [vmem:[#allocation5 + $0xd6c] ss:$16 sps:$4 sm:$0xff]  }
 0x1f1   :  { %3547 = vmatpush1.bf16.msra.mxu0 %v5765_v9  ;;  %3891 = vmatpush1.bf16.msra.mxu1 %v5768_v10  ;;  %v5855_v9 = vld [vmem:[#allocation5 + $0xd60] ss:$16 sps:$4 sm:$0xff]   ;;  %v5858_v10 = vld [vmem:[#allocation5 + $0xd68] ss:$16 sps:$4 sm:$0xff]  }
 0x1f2   :  { %3548 = vmatprep.subr.bf16.mxu0 %v5773_v11  ;;  %3892 = vmatprep.subr.bf16.mxu1 %v5776_v12  ;;  %v5863_v11 = vld [vmem:[#allocation5 + $0xd84] ss:$16 sps:$4 sm:$0xff]   ;;  %v5866_v12 = vld [vmem:[#allocation5 + $0xd8c] ss:$16 sps:$4 sm:$0xff]  }
 0x1f5   :  { %3549 = vmatpush1.bf16.msra.mxu0 %v5771_v13  ;;  %3893 = vmatpush1.bf16.msra.mxu1 %v5774_v16  ;;  %v5861_v13 = vld [vmem:[#allocation5 + $0xd80] ss:$16 sps:$4 sm:$0xff]   ;;  %v5864_v16 = vld [vmem:[#allocation5 + $0xd88] ss:$16 sps:$4 sm:$0xff]  }
 0x1f6   :  { %3550 = vmatprep.subr.bf16.mxu0 %v5779_v17  ;;  %3894 = vmatprep.subr.bf16.mxu1 %v5782_v20  ;;  %v5869_v17 = vld [vmem:[#allocation5 + $0xda4] ss:$16 sps:$4 sm:$0xff]   ;;  %v5872_v20 = vld [vmem:[#allocation5 + $0xdac] ss:$16 sps:$4 sm:$0xff]  }
 0x1f9   :  { %3551 = vmatpush1.bf16.msra.mxu0 %v5777_v22  ;;  %3895 = vmatpush1.bf16.msra.mxu1 %v5780_v24  ;;  %v5867_v22 = vld [vmem:[#allocation5 + $0xda0] ss:$16 sps:$4 sm:$0xff]   ;;  %v5870_v24 = vld [vmem:[#allocation5 + $0xda8] ss:$16 sps:$4 sm:$0xff]  }
 0x1fa   :  { %3552 = vmatprep.subr.bf16.mxu0 %v5785_v14  ;;  %3896 = vmatprep.subr.bf16.mxu1 %v5788_v15  ;;  %v5875_v14 = vld [vmem:[#allocation5 + $0xdc4] ss:$16 sps:$4 sm:$0xff]   ;;  %v5878_v15 = vld [vmem:[#allocation5 + $0xdcc] ss:$16 sps:$4 sm:$0xff]  }
 0x1fd   :  { %3553 = vmatpush1.bf16.msra.mxu0 %v5783_v27  ;;  %3897 = vmatpush1.bf16.msra.mxu1 %v5786_v28  ;;  %v5873_v27 = vld [vmem:[#allocation5 + $0xdc0] ss:$16 sps:$4 sm:$0xff]   ;;  %v5876_v28 = vld [vmem:[#allocation5 + $0xdc8] ss:$16 sps:$4 sm:$0xff]  }
 0x1fe   :  { %3565 = vmatprep.subr.bf16.mxu0 %v5791_v18  ;;  %3909 = vmatprep.subr.bf16.mxu1 %v5794_v19  ;;  %v5881_v18 = vld [vmem:[#allocation5 + $0xde4] ss:$16 sps:$4 sm:$0xff]   ;;  %v5884_v19 = vld [vmem:[#allocation5 + $0xdec] ss:$16 sps:$4 sm:$0xff]  }
 0x200   :  { %3555 = vmatmul.mubr.bf16.vlgmr.msra.gmra.mrb[0].mxu0 %v4499_v29  ;;  %3899 = vmatmul.mubr.bf16.vlgmr.msra.gmra.mrb[0].mxu1 %v4499_v29  ;;  %v5879_v29 = vld [vmem:[#allocation5 + $0xde0] ss:$16 sps:$4 sm:$0xff]  }
 0x201   :  { %3566 = vmatpush1.bf16.msra.mxu0 %v5789_v32  ;;  %3910 = vmatpush1.bf16.msra.mxu1 %v5792_v21  ;;  %v5882_v32 = vld [vmem:[#allocation5 + $0xde8] ss:$16 sps:$4 sm:$0xff]   ;;  %v5887_v21 = vld [vmem:[#allocation5 + $0xe04] ss:$16 sps:$4 sm:$0xff]  }
 0x202   :  { %3567 = vmatprep.subr.bf16.mxu0 %v5797_v23  ;;  %3911 = vmatprep.subr.bf16.mxu1 %v5800_v33  ;;  %v5890_v23 = vld [vmem:[#allocation5 + $0xe0c] ss:$16 sps:$4 sm:$0xff]   ;;  %v4501_v33 = vcombine.low %v6393_v30, %v6395_v31  ;;  %v5891_v30 = vld [vmem:[#allocation5 + $0xe20] ss:$16 sps:$4 sm:$0xff]   ;;  %v5894_v31 = vld [vmem:[#allocation5 + $0xe28] ss:$16 sps:$4 sm:$0xff]  }
 0x203   :  { %3597 = vmatprep.mubr.bf16.mxu0 %v4502_v34  ;;  %3941 = vmatprep.mubr.bf16.mxu1 %v4502_v34  ;;  %v6401_v34 = vld [vmem:[#allocation2 + $0x38] sm:$0xff] }
 0x205   :  { %3568 = vmatpush1.bf16.msra.mxu0 %v5795_v25  ;;  %3912 = vmatpush1.bf16.msra.mxu1 %v5798_v26  ;;  %v6403_v25 = vld [vmem:[#allocation2 + $0x78] sm:$0xff]  ;;  %v5885_v26 = vld [vmem:[#allocation5 + $0xe00] ss:$16 sps:$4 sm:$0xff]  }
 0x206   :  { %3569 = vmatprep.subr.bf16.mxu0 %v5803_v35  ;;  %3913 = vmatprep.subr.bf16.mxu1 %v5806_v36  ;;  %v5888_v35 = vld [vmem:[#allocation5 + $0xe08] ss:$16 sps:$4 sm:$0xff]   ;;  %v5893_v36 = vld [vmem:[#allocation5 + $0xe24] ss:$16 sps:$4 sm:$0xff]  }
 0x209   :  { %3570 = vmatpush1.bf16.msra.mxu0 %v5801_v37  ;;  %3914 = vmatpush1.bf16.msra.mxu1 %v5804_v38  ;;  %v5896_v37 = vld [vmem:[#allocation5 + $0xe2c] ss:$16 sps:$4 sm:$0xff]   ;;  %v4504_v38 = vcombine.high %v6401_v34, %v6403_v25 }
 0x20a   :  { %3571 = vmatprep.subr.bf16.mxu0 %v5809_v39  ;;  %3915 = vmatprep.subr.bf16.mxu1 %v5812_v40  ;;  %v5899_v39 = vld [vmem:[#allocation5 + $0xe44] ss:$16 sps:$4 sm:$0xff]   ;;  %v5902_v40 = vld [vmem:[#allocation5 + $0xe4c] ss:$16 sps:$4 sm:$0xff]  }
 0x20d   :  { %3572 = vmatpush1.bf16.msra.mxu0 %v5807_v41  ;;  %3916 = vmatpush1.bf16.msra.mxu1 %v5810_v42  ;;  %v5897_v41 = vld [vmem:[#allocation5 + $0xe40] ss:$16 sps:$4 sm:$0xff]   ;;  %v5900_v42 = vld [vmem:[#allocation5 + $0xe48] ss:$16 sps:$4 sm:$0xff]  }
 0x20e   :  { %3573 = vmatprep.subr.bf16.mxu0 %v5815_v43  ;;  %3917 = vmatprep.subr.bf16.mxu1 %v5818_v44  ;;  %v5905_v43 = vld [vmem:[#allocation5 + $0xe64] ss:$16 sps:$4 sm:$0xff]   ;;  %v5908_v44 = vld [vmem:[#allocation5 + $0xe6c] ss:$16 sps:$4 sm:$0xff]  }
 0x211   :  { %3574 = vmatpush1.bf16.msra.mxu0 %v5813_v45  ;;  %3918 = vmatpush1.bf16.msra.mxu1 %v5816_v46  ;;  %v5903_v45 = vld [vmem:[#allocation5 + $0xe60] ss:$16 sps:$4 sm:$0xff]   ;;  %v5906_v46 = vld [vmem:[#allocation5 + $0xe68] ss:$16 sps:$4 sm:$0xff]  }
 0x212   :  { %3575 = vmatprep.subr.bf16.mxu0 %v5821_v47  ;;  %3919 = vmatprep.subr.bf16.mxu1 %v5824_v48  ;;  %v5911_v47 = vld [vmem:[#allocation5 + $0xe84] ss:$16 sps:$4 sm:$0xff]   ;;  %v5914_v48 = vld [vmem:[#allocation5 + $0xe8c] ss:$16 sps:$4 sm:$0xff]  }
 0x215   :  { %3576 = vmatpush1.bf16.msra.mxu0 %v5819_v49  ;;  %3920 = vmatpush1.bf16.msra.mxu1 %v5822_v50  ;;  %v5909_v49 = vld [vmem:[#allocation5 + $0xe80] ss:$16 sps:$4 sm:$0xff]   ;;  %v5912_v50 = vld [vmem:[#allocation5 + $0xe88] ss:$16 sps:$4 sm:$0xff]  }
 0x216   :  { %3577 = vmatprep.subr.bf16.mxu0 %v5827_v51  ;;  %3921 = vmatprep.subr.bf16.mxu1 %v5830_v52  ;;  %v5917_v51 = vld [vmem:[#allocation5 + $0xea4] ss:$16 sps:$4 sm:$0xff]   ;;  %v5920_v52 = vld [vmem:[#allocation5 + $0xeac] ss:$16 sps:$4 sm:$0xff]  }
 0x219   :  { %3578 = vmatpush1.bf16.msra.mxu0 %v5825_v53  ;;  %3922 = vmatpush1.bf16.msra.mxu1 %v5828_v54  ;;  %v5915_v53 = vld [vmem:[#allocation5 + $0xea0] ss:$16 sps:$4 sm:$0xff]   ;;  %v5918_v54 = vld [vmem:[#allocation5 + $0xea8] ss:$16 sps:$4 sm:$0xff]  }
 0x21a   :  { %3579 = vmatprep.subr.bf16.mxu0 %v5833_v55  ;;  %3923 = vmatprep.subr.bf16.mxu1 %v5836_v56  ;;  %v5923_v55 = vld [vmem:[#allocation5 + $0xec4] ss:$16 sps:$4 sm:$0xff]   ;;  %v5926_v56 = vld [vmem:[#allocation5 + $0xecc] ss:$16 sps:$4 sm:$0xff]  }
 0x21d   :  { %3580 = vmatpush1.bf16.msra.mxu0 %v5831_v57  ;;  %3924 = vmatpush1.bf16.msra.mxu1 %v5834_v58  ;;  %v5921_v57 = vld [vmem:[#allocation5 + $0xec0] ss:$16 sps:$4 sm:$0xff]   ;;  %v5924_v58 = vld [vmem:[#allocation5 + $0xec8] ss:$16 sps:$4 sm:$0xff]  }
 0x21e   :  { %3581 = vmatprep.subr.bf16.mxu0 %v5839_v59  ;;  %3925 = vmatprep.subr.bf16.mxu1 %v5842_v60  ;;  %v5929_v59 = vld [vmem:[#allocation5 + $0xee4] ss:$16 sps:$4 sm:$0xff]   ;;  %v5932_v60 = vld [vmem:[#allocation5 + $0xeec] ss:$16 sps:$4 sm:$0xff]  }
 0x221   :  { %3582 = vmatpush1.bf16.msra.mxu0 %v5837_v61  ;;  %3926 = vmatpush1.bf16.msra.mxu1 %v5840_v62  ;;  %v5927_v61 = vld [vmem:[#allocation5 + $0xee0] ss:$16 sps:$4 sm:$0xff]   ;;  %v5930_v62 = vld [vmem:[#allocation5 + $0xee8] ss:$16 sps:$4 sm:$0xff]  }
 0x222   :  { %3583 = vmatprep.subr.bf16.mxu0 %v5845_v63  ;;  %3927 = vmatprep.subr.bf16.mxu1 %v5848_v0  ;;  %v5935_v63 = vld [vmem:[#allocation5 + $0xf04] ss:$16 sps:$4 sm:$0xff]   ;;  %v5938_v0 = vld [vmem:[#allocation5 + $0xf0c] ss:$16 sps:$4 sm:$0xff]  }
 0x225   :  { %3584 = vmatpush1.bf16.msra.mxu0 %v5843_v1  ;;  %3928 = vmatpush1.bf16.msra.mxu1 %v5846_v2  ;;  %v5933_v1 = vld [vmem:[#allocation5 + $0xf00] ss:$16 sps:$4 sm:$0xff]   ;;  %v5936_v2 = vld [vmem:[#allocation5 + $0xf08] ss:$16 sps:$4 sm:$0xff]  }
 0x226   :  { %3585 = vmatprep.subr.bf16.mxu0 %v5851_v3  ;;  %3929 = vmatprep.subr.bf16.mxu1 %v5854_v4  ;;  %v5941_v3 = vld [vmem:[#allocation5 + $0xf24] ss:$16 sps:$4 sm:$0xff]   ;;  %v5944_v4 = vld [vmem:[#allocation5 + $0xf2c] ss:$16 sps:$4 sm:$0xff]  }
 0x229   :  { %3586 = vmatpush1.bf16.msra.mxu0 %v5849_v5  ;;  %3930 = vmatpush1.bf16.msra.mxu1 %v5852_v6  ;;  %v5939_v5 = vld [vmem:[#allocation5 + $0xf20] ss:$16 sps:$4 sm:$0xff]   ;;  %v5942_v6 = vld [vmem:[#allocation5 + $0xf28] ss:$16 sps:$4 sm:$0xff]  }
 0x22a   :  { %3587 = vmatprep.subr.bf16.mxu0 %v5857_v7  ;;  %3931 = vmatprep.subr.bf16.mxu1 %v5860_v8  ;;  %v5947_v7 = vld [vmem:[#allocation5 + $0xf44] ss:$16 sps:$4 sm:$0xff]   ;;  %v5950_v8 = vld [vmem:[#allocation5 + $0xf4c] ss:$16 sps:$4 sm:$0xff]  }
 0x22d   :  { %3588 = vmatpush1.bf16.msra.mxu0 %v5855_v9  ;;  %3932 = vmatpush1.bf16.msra.mxu1 %v5858_v10  ;;  %v5945_v9 = vld [vmem:[#allocation5 + $0xf40] ss:$16 sps:$4 sm:$0xff]   ;;  %v5948_v10 = vld [vmem:[#allocation5 + $0xf48] ss:$16 sps:$4 sm:$0xff]  }
 0x22e   :  { %3589 = vmatprep.subr.bf16.mxu0 %v5863_v11  ;;  %3933 = vmatprep.subr.bf16.mxu1 %v5866_v12  ;;  %v5953_v11 = vld [vmem:[#allocation5 + $0xf64] ss:$16 sps:$4 sm:$0xff]   ;;  %v5956_v12 = vld [vmem:[#allocation5 + $0xf6c] ss:$16 sps:$4 sm:$0xff]  }
 0x231   :  { %3590 = vmatpush1.bf16.msra.mxu0 %v5861_v13  ;;  %3934 = vmatpush1.bf16.msra.mxu1 %v5864_v16  ;;  %v5951_v13 = vld [vmem:[#allocation5 + $0xf60] ss:$16 sps:$4 sm:$0xff]   ;;  %v5954_v16 = vld [vmem:[#allocation5 + $0xf68] ss:$16 sps:$4 sm:$0xff]  }
 0x232   :  { %3591 = vmatprep.subr.bf16.mxu0 %v5869_v17  ;;  %3935 = vmatprep.subr.bf16.mxu1 %v5872_v20  ;;  %v5959_v17 = vld [vmem:[#allocation5 + $0xf84] ss:$16 sps:$4 sm:$0xff]   ;;  %v5962_v20 = vld [vmem:[#allocation5 + $0xf8c] ss:$16 sps:$4 sm:$0xff]  }
 0x235   :  { %3592 = vmatpush1.bf16.msra.mxu0 %v5867_v22  ;;  %3936 = vmatpush1.bf16.msra.mxu1 %v5870_v24  ;;  %v5957_v22 = vld [vmem:[#allocation5 + $0xf80] ss:$16 sps:$4 sm:$0xff]   ;;  %v5960_v24 = vld [vmem:[#allocation5 + $0xf88] ss:$16 sps:$4 sm:$0xff]  }
 0x236   :  { %3593 = vmatprep.subr.bf16.mxu0 %v5875_v14  ;;  %3937 = vmatprep.subr.bf16.mxu1 %v5878_v15  ;;  %v5965_v14 = vld [vmem:[#allocation5 + $0xfa4] ss:$16 sps:$4 sm:$0xff]   ;;  %v5968_v15 = vld [vmem:[#allocation5 + $0xfac] ss:$16 sps:$4 sm:$0xff]  }
 0x239   :  { %3594 = vmatpush1.bf16.msra.mxu0 %v5873_v27  ;;  %3938 = vmatpush1.bf16.msra.mxu1 %v5876_v28  ;;  %v5963_v27 = vld [vmem:[#allocation5 + $0xfa0] ss:$16 sps:$4 sm:$0xff]   ;;  %v5966_v28 = vld [vmem:[#allocation5 + $0xfa8] ss:$16 sps:$4 sm:$0xff]  }
 0x23a   :  { %3595 = vmatprep.subr.bf16.mxu0 %v5881_v18  ;;  %3939 = vmatprep.subr.bf16.mxu1 %v5884_v19  ;;  %v5971_v18 = vld [vmem:[#allocation5 + $0xfc4] ss:$16 sps:$4 sm:$0xff]   ;;  %v5974_v19 = vld [vmem:[#allocation5 + $0xfcc] ss:$16 sps:$4 sm:$0xff]  }
 0x23d   :  { %3596 = vmatpush1.bf16.msra.mxu0 %v5879_v29  ;;  %3940 = vmatpush1.bf16.msra.mxu1 %v5882_v32  ;;  %v5969_v29 = vld [vmem:[#allocation5 + $0xfc0] ss:$16 sps:$4 sm:$0xff]   ;;  %v5972_v32 = vld [vmem:[#allocation5 + $0xfc8] ss:$16 sps:$4 sm:$0xff]  }
 0x23e   :  { %3608 = vmatprep.subr.bf16.mxu0 %v5887_v21  ;;  %3952 = vmatprep.subr.bf16.mxu1 %v5890_v23  ;;  %v5977_v21 = vld [vmem:[#allocation5 + $0xfe4] ss:$16 sps:$4 sm:$0xff]   ;;  %v5980_v23 = vld [vmem:[#allocation5 + $0xfec] ss:$16 sps:$4 sm:$0xff]  }
 0x240   :  { %3598 = vmatmul.mubr.bf16.vlgmr.msra.gmra.mrb[0].mxu0 %v4501_v33  ;;  %3942 = vmatmul.mubr.bf16.vlgmr.msra.gmra.mrb[0].mxu1 %v4501_v33  ;;  %v5975_v33 = vld [vmem:[#allocation5 + $0xfe0] ss:$16 sps:$4 sm:$0xff]  }
 0x241   :  { %3609 = vmatpush1.bf16.msra.mxu0 %v5885_v26  ;;  %3953 = vmatpush1.bf16.msra.mxu1 %v5888_v35  ;;  %v5978_v26 = vld [vmem:[#allocation5 + $0xfe8] ss:$16 sps:$4 sm:$0xff]  }
 0x242   :  { %3610 = vmatprep.subr.bf16.mxu0 %v5893_v36  ;;  %3954 = vmatprep.subr.bf16.mxu1 %v5896_v37  ;;  %v5981_v35 = vld [vmem:[#allocation8 + $0x40] sm:$0xff]   ;;  %v4503_v37 = vcombine.low %v6401_v34, %v6403_v25  ;;  %v5991_v34 = vld [vmem:[#allocation8 + $0x10] sm:$0xff]  }
 0x243   :  { %3640 = vmatprep.mubr.bf16.mxu0 %v4504_v38  ;;  %3984 = vmatprep.mubr.bf16.mxu1 %v4504_v38  ;;  %v5982_v36 = vld [vmem:[#allocation8 + $0xc0] sm:$0xff]   ;;  %v5992_v25 = vld [vmem:[#allocation8 + $0x90] sm:$0xff]  }
 0x244   :  { %v5983_v38 = vld [vmem:[#allocation8] sm:$0xff]  }
 0x245   :  { %3611 = vmatpush1.bf16.msra.mxu0 %v5891_v30  ;;  %3955 = vmatpush1.bf16.msra.mxu1 %v5894_v31  ;;  %v5984_v30 = vld [vmem:[#allocation8 + $0x80] sm:$0xff]   ;;  %v5985_v31 = vld [vmem:[#allocation8 + $0x48] sm:$0xff]  }
 0x246   :  { %3612 = vmatprep.subr.bf16.mxu0 %v5899_v39  ;;  %3956 = vmatprep.subr.bf16.mxu1 %v5902_v40  ;;  %v5986_v39 = vld [vmem:[#allocation8 + $0xc8] sm:$0xff]  }
 0x247   :  { %v5987_v40 = vld [vmem:[#allocation8 + $0x8] sm:$0xff]  }
 0x249   :  { %3613 = vmatpush1.bf16.msra.mxu0 %v5897_v41  ;;  %3957 = vmatpush1.bf16.msra.mxu1 %v5900_v42  ;;  %v5988_v41 = vld [vmem:[#allocation8 + $0x88] sm:$0xff]   ;;  %v5989_v42 = vld [vmem:[#allocation8 + $0x50] sm:$0xff]  }
 0x24a   :  { %3614 = vmatprep.subr.bf16.mxu0 %v5905_v43  ;;  %3958 = vmatprep.subr.bf16.mxu1 %v5908_v44  ;;  %v5990_v43 = vld [vmem:[#allocation8 + $0xd0] sm:$0xff]   ;;  %v5993_v44 = vld [vmem:[#allocation8 + $0x58] sm:$0xff]  }
 0x24d   :  { %3615 = vmatpush1.bf16.msra.mxu0 %v5903_v45  ;;  %3959 = vmatpush1.bf16.msra.mxu1 %v5906_v46  ;;  %v5994_v45 = vld [vmem:[#allocation8 + $0xd8] sm:$0xff]  }
 0x24e   :  { %3616 = vmatprep.subr.bf16.mxu0 %v5911_v47  ;;  %3960 = vmatprep.subr.bf16.mxu1 %v5914_v48  ;;  %v5995_v46 = vld [vmem:[#allocation8 + $0x18] sm:$0xff]   ;;  %v5997_v48 = vld [vmem:[#allocation8 + $0x60] sm:$0xff]  }
 0x24f   :  { %v5996_v47 = vld [vmem:[#allocation8 + $0x98] sm:$0xff]  }
 0x251   :  { %3617 = vmatpush1.bf16.msra.mxu0 %v5909_v49  ;;  %3961 = vmatpush1.bf16.msra.mxu1 %v5912_v50  ;;  %v5998_v49 = vld [vmem:[#allocation8 + $0xe0] sm:$0xff]  }
 0x252   :  { %3618 = vmatprep.subr.bf16.mxu0 %v5917_v51  ;;  %3962 = vmatprep.subr.bf16.mxu1 %v5920_v52  ;;  %v5999_v50 = vld [vmem:[#allocation8 + $0x20] sm:$0xff]   ;;  %v6001_v52 = vld [vmem:[#allocation8 + $0x68] sm:$0xff]  }
 0x253   :  { %v6000_v51 = vld [vmem:[#allocation8 + $0xa0] sm:$0xff]  }
 0x255   :  { %3619 = vmatpush1.bf16.msra.mxu0 %v5915_v53  ;;  %3963 = vmatpush1.bf16.msra.mxu1 %v5918_v54  ;;  %v6002_v53 = vld [vmem:[#allocation8 + $0xe8] sm:$0xff]  }
 0x256   :  { %3620 = vmatprep.subr.bf16.mxu0 %v5923_v55  ;;  %3964 = vmatprep.subr.bf16.mxu1 %v5926_v56  ;;  %v6003_v54 = vld [vmem:[#allocation8 + $0x28] sm:$0xff]   ;;  %v6005_v56 = vld [vmem:[#allocation8 + $0x70] sm:$0xff]  }
 0x257   :  { %v6004_v55 = vld [vmem:[#allocation8 + $0xa8] sm:$0xff]  }
 0x259   :  { %3621 = vmatpush1.bf16.msra.mxu0 %v5921_v57  ;;  %3965 = vmatpush1.bf16.msra.mxu1 %v5924_v58  ;;  %v6006_v57 = vld [vmem:[#allocation8 + $0xf0] sm:$0xff]  }
 0x25a   :  { %3622 = vmatprep.subr.bf16.mxu0 %v5929_v59  ;;  %3966 = vmatprep.subr.bf16.mxu1 %v5932_v60  ;;  %v6007_v58 = vld [vmem:[#allocation8 + $0x30] sm:$0xff]   ;;  %v6009_v60 = vld [vmem:[#allocation8 + $0x78] sm:$0xff]  }
 0x25b   :  { %v6008_v59 = vld [vmem:[#allocation8 + $0xb0] sm:$0xff]  }
 0x25d   :  { %3623 = vmatpush1.bf16.msra.mxu0 %v5927_v61  ;;  %3967 = vmatpush1.bf16.msra.mxu1 %v5930_v62  ;;  %v6010_v61 = vld [vmem:[#allocation8 + $0xf8] sm:$0xff]  }
 0x25e   :  { %3624 = vmatprep.subr.bf16.mxu0 %v5935_v63  ;;  %3968 = vmatprep.subr.bf16.mxu1 %v5938_v0  ;;  %v6011_v62 = vld [vmem:[#allocation8 + $0x38] sm:$0xff]   ;;  %v6219_v0 = vmov 0.0  }
 0x25f   :  { %v6012_v63 = vld [vmem:[#allocation8 + $0xb8] sm:$0xff]  }
 0x261   :  { %3625 = vmatpush1.bf16.msra.mxu0 %v5933_v1  ;;  %3969 = vmatpush1.bf16.msra.mxu1 %v5936_v2  ;;  %v647_v1 = vlaneseq }
 0x262   :  { %3626 = vmatprep.subr.bf16.mxu0 %v5941_v3  ;;  %3970 = vmatprep.subr.bf16.mxu1 %v5944_v4 }
 0x263   :  { %v648_v2 = vshrl.u32 %v647_v1, 7 }
 0x265   :  { %3627 = vmatpush1.bf16.msra.mxu0 %v5939_v5  ;;  %3971 = vmatpush1.bf16.msra.mxu1 %v5942_v6  ;;  %v649_v3 = vsub.s32 0, %v648_v2  ;;  %v657_v4 = vsub.s32 2, %v648_v2  ;;  %v645_v5 = vld [vmem:[#allocation7] sm:$0xf]  ;;  %v653_v6 = vsub.s32 1, %v648_v2 }
 0x266   :  { %3628 = vmatprep.subr.bf16.mxu0 %v5947_v7  ;;  %3972 = vmatprep.subr.bf16.mxu1 %v5950_v8  ;;  %v661_v7 = vsub.s32 3, %v648_v2 }
 0x267   :  { %v650_v8 = vrot.slane %v645_v5, %v649_v3 }
 0x269   :  { %3629 = vmatpush1.bf16.msra.mxu0 %v5945_v9  ;;  %3973 = vmatpush1.bf16.msra.mxu1 %v5948_v10  ;;  %v658_v9 = vrot.slane %v645_v5, %v657_v4  ;;  %v654_v10 = vrot.slane %v645_v5, %v653_v6  ;;  %v5050_v4 = vld [vmem:[#allocation13] ss:$0 sm:$0xff] }
 0x26a   :  { %3630 = vmatprep.subr.bf16.mxu0 %v5953_v11  ;;  %3974 = vmatprep.subr.bf16.mxu1 %v5956_v12  ;;  %v662_v11 = vrot.slane %v645_v5, %v661_v7 }
 0x26d   :  { %3631 = vmatpush1.bf16.msra.mxu0 %v5951_v13  ;;  %3975 = vmatpush1.bf16.msra.mxu1 %v5954_v16 }
 0x26e   :  { %3632 = vmatprep.subr.bf16.mxu0 %v5959_v17  ;;  %3976 = vmatprep.subr.bf16.mxu1 %v5962_v20 }
 0x271   :  { %3633 = vmatpush1.bf16.msra.mxu0 %v5957_v22  ;;  %3977 = vmatpush1.bf16.msra.mxu1 %v5960_v24 }
 0x272   :  { %3634 = vmatprep.subr.bf16.mxu0 %v5965_v14  ;;  %3978 = vmatprep.subr.bf16.mxu1 %v5968_v15 }
 0x275   :  { %3635 = vmatpush1.bf16.msra.mxu0 %v5963_v27  ;;  %3979 = vmatpush1.bf16.msra.mxu1 %v5966_v28 }
 0x276   :  { %3636 = vmatprep.subr.bf16.mxu0 %v5971_v18  ;;  %3980 = vmatprep.subr.bf16.mxu1 %v5974_v19 }
 0x279   :  { %3637 = vmatpush1.bf16.msra.mxu0 %v5969_v29  ;;  %3981 = vmatpush1.bf16.msra.mxu1 %v5972_v32 }
 0x27a   :  { %3638 = vmatprep.subr.bf16.mxu0 %v5977_v21  ;;  %3982 = vmatprep.subr.bf16.mxu1 %v5980_v23 }
 0x27d   :  { %3639 = vmatpush1.bf16.msra.mxu0 %v5975_v33  ;;  %3983 = vmatpush1.bf16.msra.mxu1 %v5978_v26 }
 0x27e   :  { %5059 = vmatprep.subr.bf16.mxu0 %v5981_v35  ;;  %5081 = vmatprep.subr.bf16.mxu1 %v5982_v36 }
 0x280   :  { %3641 = vmatmul.mubr.bf16.vlgmr.msra.gmra.mrb[0].mxu0 %v4503_v37  ;;  %3985 = vmatmul.mubr.bf16.vlgmr.msra.gmra.mrb[0].mxu1 %v4503_v37 }
 0x281   :  { %5060 = vmatpush3.bf16.msra.mxu0 %v5983_v38  ;;  %5082 = vmatpush3.bf16.msra.mxu1 %v5984_v30 }
 0x282   :  { %5061 = vmatprep.subr.bf16.mxu0 %v5985_v31  ;;  %5083 = vmatprep.subr.bf16.mxu1 %v5986_v39 }
 0x285   :  { %5062 = vmatpush3.bf16.msra.mxu0 %v5987_v40  ;;  %5084 = vmatpush3.bf16.msra.mxu1 %v5988_v41 }
 0x286   :  { %5063 = vmatprep.subr.bf16.mxu0 %v5989_v42  ;;  %5085 = vmatprep.subr.bf16.mxu1 %v5990_v43  ;;  %v6013_v42 = vld [vmem:[#allocation11] sm:$0xff]   ;;  %v6014_v43 = vld [vmem:[#allocation11 + $0x8] sm:$0xff]  }
 0x289   :  { %5064 = vmatpush3.bf16.msra.mxu0 %v5991_v34  ;;  %5086 = vmatpush3.bf16.msra.mxu1 %v5992_v25  ;;  %v6015_v34 = vld [vmem:[#allocation11 + $0x10] sm:$0xff]   ;;  %v6016_v25 = vld [vmem:[#allocation11 + $0x18] sm:$0xff]  }
 0x28a   :  { %5065 = vmatprep.subr.bf16.mxu0 %v5993_v44  ;;  %5087 = vmatprep.subr.bf16.mxu1 %v5994_v45  ;;  %v6017_v44 = vld [vmem:[#allocation11 + $0x20] sm:$0xff]   ;;  %v6018_v45 = vld [vmem:[#allocation11 + $0x28] sm:$0xff]  }
 0x28d   :  { %5066 = vmatpush3.bf16.msra.mxu0 %v5995_v46  ;;  %5088 = vmatpush3.bf16.msra.mxu1 %v5996_v47  ;;  %v6019_v46 = vld [vmem:[#allocation11 + $0x30] sm:$0xff]   ;;  %v6020_v47 = vld [vmem:[#allocation11 + $0x38] sm:$0xff]  }
 0x28e   :  { %5067 = vmatprep.subr.bf16.mxu0 %v5997_v48  ;;  %5089 = vmatprep.subr.bf16.mxu1 %v5998_v49 }
 0x291   :  { %5068 = vmatpush3.bf16.msra.mxu0 %v5999_v50  ;;  %5090 = vmatpush3.bf16.msra.mxu1 %v6000_v51  ;;  %v5017_v50 = vld [vmem:[#allocation10] ss:$0 sm:$0xff] }
 0x292   :  { %5069 = vmatprep.subr.bf16.mxu0 %v6001_v52  ;;  %5091 = vmatprep.subr.bf16.mxu1 %v6002_v53 }
 0x295   :  { %5070 = vmatpush3.bf16.msra.mxu0 %v6003_v54  ;;  %5092 = vmatpush3.bf16.msra.mxu1 %v6004_v55 }
 0x296   :  { %5071 = vmatprep.subr.bf16.mxu0 %v6005_v56  ;;  %5093 = vmatprep.subr.bf16.mxu1 %v6006_v57 }
 0x299   :  { %5072 = vmatpush3.bf16.msra.mxu0 %v6007_v58  ;;  %5094 = vmatpush3.bf16.msra.mxu1 %v6008_v59 }
 0x29a   :  { %5073 = vmatprep.subr.bf16.mxu0 %v6009_v60  ;;  %5095 = vmatprep.subr.bf16.mxu1 %v6010_v61 }
 0x29d   :  { %5074 = vmatpush3.bf16.msra.mxu0 %v6011_v62  ;;  %5096 = vmatpush3.bf16.msra.mxu1 %v6012_v63 }
 0x29e   :  { %5112 = vmatprep.subr.bf16.mxu0 %v6219_v0 }
 0x353   :  { %v3642_v12 = vpop.f32.mrb[0].mxu0  ;;  %v3986_v13 = vpop.f32.mrb[0].mxu1 }
 0x354   :  { %v5132_v16 = vadd.f32 %v3642_v12, %v650_v8  ;;  %v5136_v17 = vadd.f32 %v3986_v13, %v658_v9  ;;  %v3644_v20 = vpop.f32.mrb[1].mxu0  ;;  %v3988_v22 = vpop.f32.mrb[1].mxu1 }
 0x355   :  { %v5133_v24 = vadd.f32 %v3644_v20, %v654_v10  ;;  %v5137_v14 = vadd.f32 %v3988_v22, %v662_v11  ;;  %v3646_v15 = vpop.f32.mrb[2].mxu0  ;;  %v3990_v27 = vpop.f32.mrb[2].mxu1 }
 0x356   :  { %v5134_v28 = vadd.f32 %v3646_v15, %v650_v8  ;;  %v5138_v18 = vadd.f32 %v3990_v27, %v658_v9  ;;  %v3648_v19 = vpop.f32.mrb[3].mxu0  ;;  %v3992_v29 = vpop.f32.mrb[3].mxu1  ;;  %v3995_v23 = vmax.f32 %v5132_v16, 0.0  ;;  %v3997_v33 = vmax.f32 %v5136_v17, 0.0 }
 0x357   :  { %v5135_v32 = vadd.f32 %v3648_v19, %v654_v10  ;;  %v5139_v21 = vadd.f32 %v3992_v29, %v662_v11  ;;  %v3996_v36 = vmax.f32 %v5133_v24, 0.0  ;;  %v3998_v37 = vmax.f32 %v5137_v14, 0.0 }
 0x358   :  { %v3999_v26 = vmax.f32 %v5134_v28, 0.0  ;;  %v4001_v35 = vmax.f32 %v5138_v18, 0.0 }
 0x359   :  { %v4000_v38 = vmax.f32 %v5135_v32, 0.0  ;;  %v4002_v30 = vmax.f32 %v5139_v21, 0.0 }
 0x35a   :  { %v4003_v31 = vpack.c.bf16 %v3999_v26, %v3995_v23  ;;  %v4005_v39 = vpack.c.bf16 %v4001_v35, %v3997_v33 }
 0x35b   :  { %v4004_v40 = vpack.c.bf16 %v4000_v38, %v3996_v36  ;;  %v4006_v41 = vpack.c.bf16 %v4002_v30, %v3998_v37 }
 0x35d   :  { %4302 = vmatprep.mubr.bf16.mxu0 %v4004_v40  ;;  %4343 = vmatprep.mubr.bf16.mxu1 %v4006_v41 }
 0x35e   :  { %4303 = vmatmul.mubr.bf16.vlgmr.msra.gmra.mrb[4].mxu0 %v4003_v31  ;;  %4344 = vmatmul.mubr.bf16.vlgmr.msra.gmra.mrb[4].mxu1 %v4005_v39 }
 0x35f   :  { %5113 = vmatpush3.bf16.msra.mxu0 %v6013_v42  ;;  %5128 = vmatprep.mubr.msk.bf16.mxu0 %vm6220_vm0, %v6219_v0 }
 0x360   :  { %5114 = vmatprep.subr.bf16.mxu0 %v6219_v0 }
 0x363   :  { %5115 = vmatpush3.bf16.msra.mxu0 %v6014_v43 }
 0x364   :  { %5116 = vmatprep.subr.bf16.mxu0 %v6219_v0 }
 0x367   :  { %5117 = vmatpush3.bf16.msra.mxu0 %v6015_v34 }
 0x368   :  { %5118 = vmatprep.subr.bf16.mxu0 %v6219_v0 }
 0x36b   :  { %5119 = vmatpush3.bf16.msra.mxu0 %v6016_v25 }
 0x36c   :  { %5120 = vmatprep.subr.bf16.mxu0 %v6219_v0 }
 0x36f   :  { %5121 = vmatpush3.bf16.msra.mxu0 %v6017_v44 }
 0x370   :  { %5122 = vmatprep.subr.bf16.mxu0 %v6219_v0 }
 0x373   :  { %5123 = vmatpush3.bf16.msra.mxu0 %v6018_v45 }
 0x374   :  { %5124 = vmatprep.subr.bf16.mxu0 %v6219_v0 }
 0x377   :  { %5125 = vmatpush3.bf16.msra.mxu0 %v6019_v46 }
 0x378   :  { %5126 = vmatprep.subr.bf16.mxu0 %v6219_v0 }
 0x37b   :  { %5127 = vmatpush3.bf16.msra.mxu0 %v6020_v47 }
 0x431   :  { %v5075_v48 = vpop.f32.mrb[4].mxu0  ;;  %v5097_v49 = vpop.f32.mrb[4].mxu1 }
 0x432   :  { %v5076_v51 = vpop.f32.mrb[5].mxu0  ;;  %v5098_v52 = vpop.f32.mrb[5].mxu1 }
 0x433   :  { %v5077_v53 = vadd.f32 %v5076_v51, %v5075_v48  ;;  %v5099_v54 = vadd.f32 %v5098_v52, %v5097_v49  ;;  %v5078_v55 = vpop.f32.mrb[6].mxu0  ;;  %v5100_v56 = vpop.f32.mrb[6].mxu1 }
 0x434   :  { %v5079_v57 = vpop.f32.mrb[7].mxu0  ;;  %v5101_v58 = vpop.f32.mrb[7].mxu1 }
 0x435   :  { %v4305_v59 = vadd.f32 %v5077_v53, %v5017_v50  ;;  %v5080_v60 = vadd.f32 %v5079_v57, %v5078_v55  ;;  %v5102_v61 = vadd.f32 %v5101_v58, %v5100_v56 }
 0x437   :  { %v4346_v62 = vadd.f32 %v5099_v54, %v4305_v59  ;;  %v4308_v63 = vadd.f32 %v5080_v60, %v5017_v50 }
 0x439   :  { %v4349_v1 = vadd.f32 %v5102_v61, %v4308_v63  ;;  %v4352_v2 = vmax.f32 %v4346_v62, 0.0 }
 0x43b   :  { %v4353_v3 = vmax.f32 %v4349_v1, 0.0 }
 0x43d   :  { %v4354_v0 = vpack.c.bf16 %v4353_v3, %v4352_v2 }
 0x43f   :  { %5129 = vmatmul.mubr.bf16.vlgmr.msra.gmra.mrb[8].mxu0 %v4354_v0 }
 0x512   :  { %v4460_v5 = vpop.f32.mrb[8].mxu0 }
 0x513   :  { %v4461_v6 = vadd.f32 %v5050_v4, %v4460_v5  ;;  %v5130_v7 = vpop.f32.mrb[9].mxu0 }
 0x514   :  { %v4463_v8 = vpop.f32.mrb[10].mxu0 }
 0x515   :  { %4467 = vst [vmem:[#allocation14] sm:$0xff] %v4461_v6  ;;  %v4464_v9 = vadd.f32 %v5050_v4, %v4463_v8  ;;  %v5131_v10 = vpop.f32.mrb[11].mxu0 }
 0x517   :  { %4468 = vst [vmem:[#allocation14 + $0x8] sm:$0xff] %v4464_v9 }
 0x518   :  { %6186 = shalt.err (!%p6183_p4)
}
 0x519   :  { %s6187_s15 = scalar_lea.hbm %s6437_s7, 256 }
 0x51a   :  { %p6188_p5 = scmp.ne.s32.totalorder %s6437_s7, %s6187_s15  ;;  %p6191_p6 = scmp.lt.u32.totalorder %s6187_s15, %s6437_s7 }
 0x51c   :  { %p6193_p7 = pnand %p6191_p6, %p6188_p5 }
 0x51e   :  { %6196 = shalt.err (!%p6193_p7)
}
 0x51f   :  { %s6222_s21 = smov 128   ;;  %s6223_s22 = smov 8  }
 0x520   :  { %4480 = dma.vmem_to_hbm [thread:$0]  %s4475_s14, 256, %s6437_s7, [#allocation4], %s6222_s21, %s6222_s21, %s6223_s22  }
 0x521   :  { %6205 = dma.done.wait [#allocation4], 256  }
 0x522   :  { %6206 = vsyncadd [#allocation4], 4294967040 }
 0x523   :  { %4484 = vsyncpa [#allocation3], 1 }
 0x524   :  { %4485 = vsyncpa [#allocation6], 1 }
 0x525   :  { %4486 = vsyncpa [#allocation9], 1 }
 0x526   :  { %4487 = vsyncpa [#allocation12], 1 }
 0x527   :  { %4488 = vsyncpa [#allocation4], 1 }

</bundles_post_ra>
